<compile_context>
chip_gen: v6e
topology: v6e:2x2x1
jax: 0.10.0
libtpu: 0.0.40
codegen_flags: <defaults>
</compile_context>

<pallas_src>
import functools

import jax
import jax.numpy as jnp
from jax.experimental import pallas as pl
from jax.experimental.pallas import tpu as pltpu

LANE = 128


def _round_up(v, m):
    return (v + m - 1) // m * m


def bottleneck_kernel(x_ref, mask_ref, w1_ref, b1_ref, w2_ref, b2_ref,
                      w3_ref, b3_ref, o_ref, pad_ref, *, th, wp):
    # x_ref   : (Hp*Wp, Cin_p)  f32   -- whole padded image, flat spatial
    # mask_ref: (Hp*Wp, 1)      f32   -- 1 at interior pixels, 0 on the halo
    # w2_ref  : (9, Cw_p, Cw_p) bf16  -- tap-major (ky*3 + kx), BN2 folded
    # o_ref   : (th*Wp, Cout_p) f32   -- this row tile's output, flat spatial
    # pad_ref : ((th+2)*Wp + 8, Cw_p) bf16 scratch -- conv2 input, zero halo
    t = pl.program_id(1)
    cw = w1_ref.shape[1]
    l_out = th * wp                 # flat output rows in this tile
    l_in = (th + 2) * wp            # flat padded rows feeding this tile
    r0 = t * l_out                  # first padded flat row of this tile
    if l_out % 8 == 0:
        r0 = pl.multiple_of(r0, 8)

    # ---- conv1 (1x1) + folded BN1 + ReLU over the tile's padded window ----
    xw = x_ref[pl.ds(r0, l_in), :]                              # (l_in, Cin) f32
    t1 = jnp.dot(xw.astype(jnp.bfloat16), w1_ref[...],
                 preferred_element_type=jnp.float32)
    # The mask restores the exact zero padding conv2 expects (halo rows would
    # otherwise carry relu(b1)).
    t1 = jnp.maximum(t1 + b1_ref[...], 0.0) * mask_ref[pl.ds(r0, l_in), :]
    pad_ref[0:l_in, :] = t1.astype(jnp.bfloat16)                # aligned full store
    pad_ref[l_in:l_in + 8, :] = jnp.zeros((8, cw), jnp.bfloat16)

    # ---- conv2 (3x3, pad=1): 9 shifted-window accumulating matmuls ----
    # Window at output flat index j for tap (ky,kx) is pad[j + ky*Wp + kx];
    # halo rows/columns are zero so they contribute nothing. No im2col slab.
    acc = None
    for ky in range(3):
        for kx in range(3):
            off = ky * wp + kx
            win = pad_ref[off:off + l_out, :]                   # (l_out, Cw) bf16
            part = jnp.dot(win, w2_ref[ky * 3 + kx],
                           preferred_element_type=jnp.float32)
            acc = part if acc is None else acc + part
    t2 = jnp.maximum(acc + b2_ref[...], 0.0)                    # (l_out, Cw) f32

    # ---- conv3 (1x1) + folded BN3 + residual add + ReLU ----
    t3 = jnp.dot(t2.astype(jnp.bfloat16), w3_ref[...],
                 preferred_element_type=jnp.float32)
    # Identity residual: original pixel (y,x) lives at padded flat row j+Wp+1.
    resid = x_ref[pl.ds(r0 + wp + 1, l_out), :]                 # (l_out, Cin_p) f32
    o_ref[...] = jnp.maximum(t3 + b3_ref[...] + resid, 0.0).astype(o_ref.dtype)


def bottleneck_pallas(x_nhwc, w1, s1, b1, w2, s2, b2, w3, s3, b3, *,
                      row_tile=None):
    N, H, W, Cin = x_nhwc.shape
    width = w1.shape[1]
    Cout = w3.shape[1]
    assert Cout == Cin, "identity residual requires inplanes == planes * 4"
    Hp, Wp = H + 2, W + 2

    # Row tile: must divide H, and tiled output blocks need 8-aligned rows.
    th = row_tile if row_tile is not None else H
    if H % th != 0 or (th != H and (th * Wp) % 8 != 0):
        th = H

    Cin_p = _round_up(Cin, LANE)
    Cw_p = _round_up(width, LANE)
    Cout_p = _round_up(Cout, LANE)
    assert Cout_p == Cin_p

    f32, bf16 = jnp.float32, jnp.bfloat16

    # Fold BN scales into conv output channels; pad channels lane-dense.
    w1p = jnp.zeros((Cin_p, Cw_p), f32).at[:Cin, :width].set(w1 * s1).astype(bf16)
    w2f = w2 * s2.reshape(1, 1, 1, width)                       # HWIO
    w2p = (jnp.zeros((3, 3, Cw_p, Cw_p), f32)
           .at[:, :, :width, :width].set(w2f)
           .reshape(9, Cw_p, Cw_p).astype(bf16))                # tap-major
    w3p = jnp.zeros((Cw_p, Cout_p), f32).at[:width, :Cout].set(w3 * s3).astype(bf16)
    b1p = jnp.zeros((1, Cw_p), f32).at[:, :width].set(b1)
    b2p = jnp.zeros((1, Cw_p), f32).at[:, :width].set(b2)
    b3p = jnp.zeros((1, Cout_p), f32).at[:, :Cout].set(b3)

    # Zero-pad spatially (conv2 halo) + channel-pad, then flatten H*W so every
    # in-kernel slice/store is a contiguous sublane window (no relayouts).
    xp = jnp.zeros((N, Hp, Wp, Cin_p), f32).at[:, 1:H + 1, 1:W + 1, :Cin].set(x_nhwc)
    xp = xp.reshape(N, Hp * Wp, Cin_p)
    mask = jnp.zeros((Hp, Wp), f32).at[1:H + 1, 1:W + 1].set(1.0).reshape(Hp * Wp, 1)

    kernel = functools.partial(bottleneck_kernel, th=th, wp=Wp)

    flops = 2 * N * (Hp * Wp * Cin_p * Cw_p
                     + H * Wp * 9 * Cw_p * Cw_p
                     + H * Wp * Cw_p * Cout_p)
    bytes_accessed = (xp.size * 4 + N * H * Wp * Cout_p * 4
                      + (w1p.size + w2p.size + w3p.size) * 2
                      + (b1p.size + b2p.size + b3p.size + mask.size) * 4)

    out_flat = pl.pallas_call(
        kernel,
        out_shape=jax.ShapeDtypeStruct((N, H * Wp, Cout_p), f32),
        grid_spec=pltpu.PrefetchScalarGridSpec(
            num_scalar_prefetch=0,
            grid=(N, H // th),
            in_specs=[
                pl.BlockSpec((None, Hp * Wp, Cin_p), lambda n, t: (n, 0, 0)),
                pl.BlockSpec((Hp * Wp, 1), lambda n, t: (0, 0)),
                pl.BlockSpec((Cin_p, Cw_p), lambda n, t: (0, 0)),
                pl.BlockSpec((1, Cw_p), lambda n, t: (0, 0)),
                pl.BlockSpec((9, Cw_p, Cw_p), lambda n, t: (0, 0, 0)),
                pl.BlockSpec((1, Cw_p), lambda n, t: (0, 0)),
                pl.BlockSpec((Cw_p, Cout_p), lambda n, t: (0, 0)),
                pl.BlockSpec((1, Cout_p), lambda n, t: (0, 0)),
            ],
            out_specs=pl.BlockSpec((None, th * Wp, Cout_p),
                                   lambda n, t: (n, t, 0)),
            scratch_shapes=[
                pltpu.VMEM(((th + 2) * Wp + 8, Cw_p), bf16),    # padded conv2 input
            ],
        ),
        compiler_params=pltpu.CompilerParams(
            dimension_semantics=("parallel", "parallel"),
            vmem_limit_bytes=48 * 1024 * 1024),
        cost_estimate=pl.CostEstimate(flops=flops, transcendentals=0,
                                      bytes_accessed=bytes_accessed),
    )(xp, mask, w1p, b1p, w2p, b2p, w3p, b3p)

    # Drop the padded columns / padded lanes (pure XLA slice, outside kernel).
    return out_flat.reshape(N, H, Wp, Cout_p)[:, :, :W, :Cout]


def bottleneck_reference(x_nhwc, w1, s1, b1, w2, s2, b2, w3, s3, b3,
                         *, bf16_matmul=False):
    """Pure-JAX reference (NHWC / HWIO). With bf16_matmul=True it mirrors the
    kernel's numerics (BN scale folded into bf16 weights, f32 accumulation)."""
    Cin, width = w1.shape
    Cout = w3.shape[1]

    def conv(a, w_hwio, pad):
        if bf16_matmul:
            a = a.astype(jnp.bfloat16)
            w_hwio = w_hwio.astype(jnp.bfloat16)
        return jax.lax.conv_general_dilated(
            a, w_hwio, window_strides=(1, 1), padding=pad,
            dimension_numbers=("NHWC", "HWIO", "NHWC"),
            preferred_element_type=jnp.float32)

    if bf16_matmul:
        w1f = w1 * s1
        w2f = w2 * s2.reshape(1, 1, 1, width)
        w3f = w3 * s3
        t = jnp.maximum(conv(x_nhwc, w1f.reshape(1, 1, Cin, width), "VALID") + b1, 0.0)
        t = jnp.maximum(conv(t, w2f, [(1, 1), (1, 1)]) + b2, 0.0)
        t = conv(t, w3f.reshape(1, 1, width, Cout), "VALID") + b3
    else:
        t = jnp.maximum(conv(x_nhwc, w1.reshape(1, 1, Cin, width), "VALID") * s1 + b1, 0.0)
        t = jnp.maximum(conv(t, w2, [(1, 1), (1, 1)]) * s2 + b2, 0.0)
        t = conv(t, w3.reshape(1, 1, width, Cout), "VALID") * s3 + b3
    return jnp.maximum(t + x_nhwc, 0.0)


def make_params(key, inplanes, planes, base_width=64, groups=1, eps=1e-5):
    width = int(planes * (base_width / 64.0)) * groups
    cout = planes * 4  # expansion = 4
    ks = jax.random.split(key, 16)

    w1 = jax.random.normal(ks[0], (inplanes, width), jnp.float32) * (2.0 / inplanes) ** 0.5
    w2 = jax.random.normal(ks[1], (3, 3, width, width), jnp.float32) * (2.0 / (9 * width)) ** 0.5
    w3 = jax.random.normal(ks[2], (width, cout), jnp.float32) * (2.0 / width) ** 0.5

    def bn(kg, kb, km, kv, c):
        gamma = 1.0 + 0.1 * jax.random.normal(kg, (c,), jnp.float32)
        beta = 0.1 * jax.random.normal(kb, (c,), jnp.float32)
        mean = 0.1 * jax.random.normal(km, (c,), jnp.float32)
        var = jax.random.uniform(kv, (c,), jnp.float32, 0.5, 1.5)
        scale = gamma / jnp.sqrt(var + eps)
        bias = beta - mean * scale
        return scale.reshape(1, c), bias.reshape(1, c)

    s1, b1 = bn(ks[3], ks[4], ks[5], ks[6], width)
    s2, b2 = bn(ks[7], ks[8], ks[9], ks[10], width)
    s3, b3 = bn(ks[11], ks[12], ks[13], ks[14], cout)
    return w1, s1, b1, w2, s2, b2, w3, s3, b3


if __name__ == "__main__":
    # inplanes = planes * expansion so the identity path is valid
    # (downsample=None), matching Bottleneck usage inside a ResNet stage.
    N, inplanes, planes, H, W = 2, 16, 4, 16, 16

    key = jax.random.PRNGKey(0)
    kx, kp = jax.random.split(key)
    x_nchw = jax.random.normal(kx, (N, inplanes, H, W), jnp.float32)  # PyTorch layout
    params = make_params(kp, inplanes, planes)

    x_nhwc = jnp.transpose(x_nchw, (0, 2, 3, 1))

    fn = jax.jit(functools.partial(bottleneck_pallas, row_tile=8))  # 2 row tiles
    out_nhwc = jax.block_until_ready(fn(x_nhwc, *params))
    out_nchw = jnp.transpose(out_nhwc, (0, 3, 1, 2))
    assert out_nchw.shape == (N, planes * 4, H, W)

    # Tight check vs a reference with identical (bf16-operand) numerics.
    ref_bf16 = bottleneck_reference(x_nhwc, *params, bf16_matmul=True)
    err_bf16 = float(jnp.max(jnp.abs(out_nhwc - ref_bf16)))
    assert jnp.allclose(out_nhwc, ref_bf16, rtol=2e-3, atol=2e-3), err_bf16

    # Loose check vs the pure-f32 PyTorch-semantics reference (bf16 tolerance).
    ref_f32 = bottleneck_reference(x_nhwc, *params, bf16_matmul=False)
    err_f32 = float(jnp.max(jnp.abs(out_nhwc - ref_f32)))
    assert jnp.allclose(out_nhwc, ref_f32, rtol=1e-1, atol=1e-1), err_f32

    print("KERNEL_OK")
</pallas_src>

<mosaic_0001>
module attributes {stable_mosaic.version = 11 : i64} {
  func.func @bottleneck_kernel(%arg0: i32, %arg1: i32, %arg2: memref<1x324x128xf32, #tpu.memory_space<vmem>>, %arg3: memref<324x1xf32, #tpu.memory_space<vmem>>, %arg4: memref<128x128xbf16, #tpu.memory_space<vmem>>, %arg5: memref<1x128xf32, #tpu.memory_space<vmem>>, %arg6: memref<9x128x128xbf16, #tpu.memory_space<vmem>>, %arg7: memref<1x128xf32, #tpu.memory_space<vmem>>, %arg8: memref<128x128xbf16, #tpu.memory_space<vmem>>, %arg9: memref<1x128xf32, #tpu.memory_space<vmem>>, %arg10: memref<1x144x128xf32, #tpu.memory_space<vmem>>, %arg11: memref<188x128xbf16, #tpu.memory_space<vmem>>) attributes {dimension_semantics = [#tpu.dimension_semantics<parallel>, #tpu.dimension_semantics<parallel>], iteration_bounds = array<i64: 2, 2>, scalar_prefetch = 0 : i64, scratch_operands = 1 : i64, tpu.core_type = #tpu.core_type<tc>, window_params = [{transform_indices = @transform_0, window_bounds = array<i64: 1, 324, 128>}, {pipeline_mode = #tpu.pipeline_mode<synchronous>, transform_indices = @transform_1, window_bounds = array<i64: 324, 1>}, {pipeline_mode = #tpu.pipeline_mode<synchronous>, transform_indices = @transform_2, window_bounds = array<i64: 128, 128>}, {pipeline_mode = #tpu.pipeline_mode<synchronous>, transform_indices = @transform_3, window_bounds = array<i64: 1, 128>}, {pipeline_mode = #tpu.pipeline_mode<synchronous>, transform_indices = @transform_4, window_bounds = array<i64: 9, 128, 128>}, {pipeline_mode = #tpu.pipeline_mode<synchronous>, transform_indices = @transform_5, window_bounds = array<i64: 1, 128>}, {pipeline_mode = #tpu.pipeline_mode<synchronous>, transform_indices = @transform_6, window_bounds = array<i64: 128, 128>}, {pipeline_mode = #tpu.pipeline_mode<synchronous>, transform_indices = @transform_7, window_bounds = array<i64: 1, 128>}, {transform_indices = @transform_8, window_bounds = array<i64: 1, 144, 128>}]} {
    %c144_i32 = arith.constant 144 : i32
    %0 = arith.muli %arg1, %c144_i32 : i32
    %1 = tpu.assume_multiple %0, 8 : i32
    %c0 = arith.constant 0 : index
    %2 = arith.index_cast %1 : i32 to index
    %c0_0 = arith.constant 0 : index
    %3 = vector.load %arg2[%c0, %2, %c0_0] : memref<1x324x128xf32, #tpu.memory_space<vmem>>, vector<1x180x128xf32>
    %4 = vector.shape_cast %3 : vector<1x180x128xf32> to vector<180x128xf32>
    %5 = arith.truncf %4 : vector<180x128xf32> to vector<180x128xbf16>
    %c0_1 = arith.constant 0 : index
    %c0_2 = arith.constant 0 : index
    %6 = vector.load %arg4[%c0_1, %c0_2] : memref<128x128xbf16, #tpu.memory_space<vmem>>, vector<128x128xbf16>
    %cst = arith.constant dense<0.000000e+00> : vector<180x128xf32>
    %7 = tpu.matmul %5, %6, %cst {dimension_numbers = #tpu.dot_dimension_numbers<[1], [0], [0], [1], [0, 0, 1, 1], [], []>} : vector<180x128xbf16>, vector<128x128xbf16>, vector<180x128xf32> -> vector<180x128xf32>
    %c0_3 = arith.constant 0 : index
    %c0_4 = arith.constant 0 : index
    %8 = vector.load %arg5[%c0_3, %c0_4] : memref<1x128xf32, #tpu.memory_space<vmem>>, vector<1x128xf32>
    %9 = vector.broadcast %8 : vector<1x128xf32> to vector<180x128xf32>
    %10 = arith.addf %7, %9 : vector<180x128xf32>
    %cst_5 = arith.constant 0.000000e+00 : f32
    %11 = vector.broadcast %cst_5 : f32 to vector<180x128xf32>
    %12 = arith.maximumf %10, %11 : vector<180x128xf32>
    %13 = arith.index_cast %1 : i32 to index
    %c0_6 = arith.constant 0 : index
    %14 = vector.load %arg3[%13, %c0_6] : memref<324x1xf32, #tpu.memory_space<vmem>>, vector<180x1xf32>
    %15 = vector.broadcast %14 : vector<180x1xf32> to vector<180x128xf32>
    %16 = arith.mulf %12, %15 : vector<180x128xf32>
    %17 = arith.truncf %16 : vector<180x128xf32> to vector<180x128xbf16>
    %c0_7 = arith.constant 0 : index
    %c0_8 = arith.constant 0 : index
    %18 = vector.load %arg11[%c0_7, %c0_8] : memref<188x128xbf16, #tpu.memory_space<vmem>>, vector<180x128xbf16>
    tpu.vector_store %arg11[%c0_7, %c0_8], %17 {strides = array<i32>} : memref<188x128xbf16, #tpu.memory_space<vmem>>, vector<180x128xbf16>,
    %cst_9 = arith.constant 0.000000e+00 : bf16
    %19 = vector.broadcast %cst_9 : bf16 to vector<8x128xbf16>
    %c180 = arith.constant 180 : index
    %c0_10 = arith.constant 0 : index
    %20 = vector.load %arg11[%c180, %c0_10] : memref<188x128xbf16, #tpu.memory_space<vmem>>, vector<8x128xbf16>
    tpu.vector_store %arg11[%c180, %c0_10], %19 {strides = array<i32>} : memref<188x128xbf16, #tpu.memory_space<vmem>>, vector<8x128xbf16>,
    %c0_11 = arith.constant 0 : index
    %c0_12 = arith.constant 0 : index
    %21 = vector.load %arg11[%c0_11, %c0_12] : memref<188x128xbf16, #tpu.memory_space<vmem>>, vector<144x128xbf16>
    %c0_13 = arith.constant 0 : index
    %c0_14 = arith.constant 0 : index
    %c0_15 = arith.constant 0 : index
    %22 = vector.load %arg6[%c0_13, %c0_14, %c0_15] : memref<9x128x128xbf16, #tpu.memory_space<vmem>>, vector<1x128x128xbf16>
    %23 = vector.shape_cast %22 : vector<1x128x128xbf16> to vector<128x128xbf16>
    %cst_16 = arith.constant dense<0.000000e+00> : vector<144x128xf32>
    %24 = tpu.matmul %21, %23, %cst_16 {dimension_numbers = #tpu.dot_dimension_numbers<[1], [0], [0], [1], [0, 0, 1, 1], [], []>} : vector<144x128xbf16>, vector<128x128xbf16>, vector<144x128xf32> -> vector<144x128xf32>
    %c1 = arith.constant 1 : index
    %c0_17 = arith.constant 0 : index
    %25 = vector.load %arg11[%c1, %c0_17] : memref<188x128xbf16, #tpu.memory_space<vmem>>, vector<144x128xbf16>
    %c1_18 = arith.constant 1 : index
    %c0_19 = arith.constant 0 : index
    %c0_20 = arith.constant 0 : index
    %26 = vector.load %arg6[%c1_18, %c0_19, %c0_20] : memref<9x128x128xbf16, #tpu.memory_space<vmem>>, vector<1x128x128xbf16>
    %27 = vector.shape_cast %26 : vector<1x128x128xbf16> to vector<128x128xbf16>
    %cst_21 = arith.constant dense<0.000000e+00> : vector<144x128xf32>
    %28 = tpu.matmul %25, %27, %cst_21 {dimension_numbers = #tpu.dot_dimension_numbers<[1], [0], [0], [1], [0, 0, 1, 1], [], []>} : vector<144x128xbf16>, vector<128x128xbf16>, vector<144x128xf32> -> vector<144x128xf32>
    %29 = arith.addf %24, %28 : vector<144x128xf32>
    %c2 = arith.constant 2 : index
    %c0_22 = arith.constant 0 : index
    %30 = vector.load %arg11[%c2, %c0_22] : memref<188x128xbf16, #tpu.memory_space<vmem>>, vector<144x128xbf16>
    %c2_23 = arith.constant 2 : index
    %c0_24 = arith.constant 0 : index
    %c0_25 = arith.constant 0 : index
    %31 = vector.load %arg6[%c2_23, %c0_24, %c0_25] : memref<9x128x128xbf16, #tpu.memory_space<vmem>>, vector<1x128x128xbf16>
    %32 = vector.shape_cast %31 : vector<1x128x128xbf16> to vector<128x128xbf16>
    %cst_26 = arith.constant dense<0.000000e+00> : vector<144x128xf32>
    %33 = tpu.matmul %30, %32, %cst_26 {dimension_numbers = #tpu.dot_dimension_numbers<[1], [0], [0], [1], [0, 0, 1, 1], [], []>} : vector<144x128xbf16>, vector<128x128xbf16>, vector<144x128xf32> -> vector<144x128xf32>
    %34 = arith.addf %29, %33 : vector<144x128xf32>
    %c18 = arith.constant 18 : index
    %c0_27 = arith.constant 0 : index
    %35 = vector.load %arg11[%c18, %c0_27] : memref<188x128xbf16, #tpu.memory_space<vmem>>, vector<144x128xbf16>
    %c3 = arith.constant 3 : index
    %c0_28 = arith.constant 0 : index
    %c0_29 = arith.constant 0 : index
    %36 = vector.load %arg6[%c3, %c0_28, %c0_29] : memref<9x128x128xbf16, #tpu.memory_space<vmem>>, vector<1x128x128xbf16>
    %37 = vector.shape_cast %36 : vector<1x128x128xbf16> to vector<128x128xbf16>
    %cst_30 = arith.constant dense<0.000000e+00> : vector<144x128xf32>
    %38 = tpu.matmul %35, %37, %cst_30 {dimension_numbers = #tpu.dot_dimension_numbers<[1], [0], [0], [1], [0, 0, 1, 1], [], []>} : vector<144x128xbf16>, vector<128x128xbf16>, vector<144x128xf32> -> vector<144x128xf32>
    %39 = arith.addf %34, %38 : vector<144x128xf32>
    %c19 = arith.constant 19 : index
    %c0_31 = arith.constant 0 : index
    %40 = vector.load %arg11[%c19, %c0_31] : memref<188x128xbf16, #tpu.memory_space<vmem>>, vector<144x128xbf16>
    %c4 = arith.constant 4 : index
    %c0_32 = arith.constant 0 : index
    %c0_33 = arith.constant 0 : index
    %41 = vector.load %arg6[%c4, %c0_32, %c0_33] : memref<9x128x128xbf16, #tpu.memory_space<vmem>>, vector<1x128x128xbf16>
    %42 = vector.shape_cast %41 : vector<1x128x128xbf16> to vector<128x128xbf16>
    %cst_34 = arith.constant dense<0.000000e+00> : vector<144x128xf32>
    %43 = tpu.matmul %40, %42, %cst_34 {dimension_numbers = #tpu.dot_dimension_numbers<[1], [0], [0], [1], [0, 0, 1, 1], [], []>} : vector<144x128xbf16>, vector<128x128xbf16>, vector<144x128xf32> -> vector<144x128xf32>
    %44 = arith.addf %39, %43 : vector<144x128xf32>
    %c20 = arith.constant 20 : index
    %c0_35 = arith.constant 0 : index
    %45 = vector.load %arg11[%c20, %c0_35] : memref<188x128xbf16, #tpu.memory_space<vmem>>, vector<144x128xbf16>
    %c5 = arith.constant 5 : index
    %c0_36 = arith.constant 0 : index
    %c0_37 = arith.constant 0 : index
    %46 = vector.load %arg6[%c5, %c0_36, %c0_37] : memref<9x128x128xbf16, #tpu.memory_space<vmem>>, vector<1x128x128xbf16>
    %47 = vector.shape_cast %46 : vector<1x128x128xbf16> to vector<128x128xbf16>
    %cst_38 = arith.constant dense<0.000000e+00> : vector<144x128xf32>
    %48 = tpu.matmul %45, %47, %cst_38 {dimension_numbers = #tpu.dot_dimension_numbers<[1], [0], [0], [1], [0, 0, 1, 1], [], []>} : vector<144x128xbf16>, vector<128x128xbf16>, vector<144x128xf32> -> vector<144x128xf32>
    %49 = arith.addf %44, %48 : vector<144x128xf32>
    %c36 = arith.constant 36 : index
    %c0_39 = arith.constant 0 : index
    %50 = vector.load %arg11[%c36, %c0_39] : memref<188x128xbf16, #tpu.memory_space<vmem>>, vector<144x128xbf16>
    %c6 = arith.constant 6 : index
    %c0_40 = arith.constant 0 : index
    %c0_41 = arith.constant 0 : index
    %51 = vector.load %arg6[%c6, %c0_40, %c0_41] : memref<9x128x128xbf16, #tpu.memory_space<vmem>>, vector<1x128x128xbf16>
    %52 = vector.shape_cast %51 : vector<1x128x128xbf16> to vector<128x128xbf16>
    %cst_42 = arith.constant dense<0.000000e+00> : vector<144x128xf32>
    %53 = tpu.matmul %50, %52, %cst_42 {dimension_numbers = #tpu.dot_dimension_numbers<[1], [0], [0], [1], [0, 0, 1, 1], [], []>} : vector<144x128xbf16>, vector<128x128xbf16>, vector<144x128xf32> -> vector<144x128xf32>
    %54 = arith.addf %49, %53 : vector<144x128xf32>
    %c37 = arith.constant 37 : index
    %c0_43 = arith.constant 0 : index
    %55 = vector.load %arg11[%c37, %c0_43] : memref<188x128xbf16, #tpu.memory_space<vmem>>, vector<144x128xbf16>
    %c7 = arith.constant 7 : index
    %c0_44 = arith.constant 0 : index
    %c0_45 = arith.constant 0 : index
    %56 = vector.load %arg6[%c7, %c0_44, %c0_45] : memref<9x128x128xbf16, #tpu.memory_space<vmem>>, vector<1x128x128xbf16>
    %57 = vector.shape_cast %56 : vector<1x128x128xbf16> to vector<128x128xbf16>
    %cst_46 = arith.constant dense<0.000000e+00> : vector<144x128xf32>
    %58 = tpu.matmul %55, %57, %cst_46 {dimension_numbers = #tpu.dot_dimension_numbers<[1], [0], [0], [1], [0, 0, 1, 1], [], []>} : vector<144x128xbf16>, vector<128x128xbf16>, vector<144x128xf32> -> vector<144x128xf32>
    %59 = arith.addf %54, %58 : vector<144x128xf32>
    %c38 = arith.constant 38 : index
    %c0_47 = arith.constant 0 : index
    %60 = vector.load %arg11[%c38, %c0_47] : memref<188x128xbf16, #tpu.memory_space<vmem>>, vector<144x128xbf16>
    %c8 = arith.constant 8 : index
    %c0_48 = arith.constant 0 : index
    %c0_49 = arith.constant 0 : index
    %61 = vector.load %arg6[%c8, %c0_48, %c0_49] : memref<9x128x128xbf16, #tpu.memory_space<vmem>>, vector<1x128x128xbf16>
    %62 = vector.shape_cast %61 : vector<1x128x128xbf16> to vector<128x128xbf16>
    %cst_50 = arith.constant dense<0.000000e+00> : vector<144x128xf32>
    %63 = tpu.matmul %60, %62, %cst_50 {dimension_numbers = #tpu.dot_dimension_numbers<[1], [0], [0], [1], [0, 0, 1, 1], [], []>} : vector<144x128xbf16>, vector<128x128xbf16>, vector<144x128xf32> -> vector<144x128xf32>
    %64 = arith.addf %59, %63 : vector<144x128xf32>
    %c0_51 = arith.constant 0 : index
    %c0_52 = arith.constant 0 : index
    %65 = vector.load %arg7[%c0_51, %c0_52] : memref<1x128xf32, #tpu.memory_space<vmem>>, vector<1x128xf32>
    %66 = vector.broadcast %65 : vector<1x128xf32> to vector<144x128xf32>
    %67 = arith.addf %64, %66 : vector<144x128xf32>
    %cst_53 = arith.constant 0.000000e+00 : f32
    %68 = vector.broadcast %cst_53 : f32 to vector<144x128xf32>
    %69 = arith.maximumf %67, %68 : vector<144x128xf32>
    %70 = arith.truncf %69 : vector<144x128xf32> to vector<144x128xbf16>
    %c0_54 = arith.constant 0 : index
    %c0_55 = arith.constant 0 : index
    %71 = vector.load %arg8[%c0_54, %c0_55] : memref<128x128xbf16, #tpu.memory_space<vmem>>, vector<128x128xbf16>
    %cst_56 = arith.constant dense<0.000000e+00> : vector<144x128xf32>
    %72 = tpu.matmul %70, %71, %cst_56 {dimension_numbers = #tpu.dot_dimension_numbers<[1], [0], [0], [1], [0, 0, 1, 1], [], []>} : vector<144x128xbf16>, vector<128x128xbf16>, vector<144x128xf32> -> vector<144x128xf32>
    %c18_i32 = arith.constant 18 : i32
    %73 = arith.addi %1, %c18_i32 : i32
    %c1_i32 = arith.constant 1 : i32
    %74 = arith.addi %73, %c1_i32 : i32
    %c0_57 = arith.constant 0 : index
    %75 = arith.index_cast %74 : i32 to index
    %c0_58 = arith.constant 0 : index
    %76 = vector.load %arg2[%c0_57, %75, %c0_58] : memref<1x324x128xf32, #tpu.memory_space<vmem>>, vector<1x144x128xf32>
    %77 = vector.shape_cast %76 : vector<1x144x128xf32> to vector<144x128xf32>
    %c0_59 = arith.constant 0 : index
    %c0_60 = arith.constant 0 : index
    %78 = vector.load %arg9[%c0_59, %c0_60] : memref<1x128xf32, #tpu.memory_space<vmem>>, vector<1x128xf32>
    %79 = vector.broadcast %78 : vector<1x128xf32> to vector<144x128xf32>
    %80 = arith.addf %72, %79 : vector<144x128xf32>
    %81 = arith.addf %80, %77 : vector<144x128xf32>
    %cst_61 = arith.constant 0.000000e+00 : f32
    %82 = vector.broadcast %cst_61 : f32 to vector<144x128xf32>
    %83 = arith.maximumf %81, %82 : vector<144x128xf32>
    %c0_62 = arith.constant 0 : index
    %c0_63 = arith.constant 0 : index
    %c0_64 = arith.constant 0 : index
    %84 = vector.load %arg10[%c0_62, %c0_63, %c0_64] : memref<1x144x128xf32, #tpu.memory_space<vmem>>, vector<1x144x128xf32>
    %85 = vector.shape_cast %84 : vector<1x144x128xf32> to vector<144x128xf32>
    %86 = vector.shape_cast %83 : vector<144x128xf32> to vector<1x144x128xf32>
    tpu.vector_store %arg10[%c0_62, %c0_63, %c0_64], %86 {strides = array<i32>} : memref<1x144x128xf32, #tpu.memory_space<vmem>>, vector<1x144x128xf32>,
    return
  }
  func.func @transform_0(%arg0: i32, %arg1: i32) -> (i32, i32, i32) {
    %c0_i32 = arith.constant 0 : i32
    %c0_i32_0 = arith.constant 0 : i32
    %c0_i32_1 = arith.constant 0 : i32
    return %arg0, %c0_i32, %c0_i32_0 : i32, i32, i32
  }
  func.func @transform_1(%arg0: i32, %arg1: i32) -> (i32, i32) {
    %c0_i32 = arith.constant 0 : i32
    %c0_i32_0 = arith.constant 0 : i32
    %c0_i32_1 = arith.constant 0 : i32
    return %c0_i32, %c0_i32_0 : i32, i32
  }
  func.func @transform_2(%arg0: i32, %arg1: i32) -> (i32, i32) {
    %c0_i32 = arith.constant 0 : i32
    %c0_i32_0 = arith.constant 0 : i32
    %c0_i32_1 = arith.constant 0 : i32
    return %c0_i32, %c0_i32_0 : i32, i32
  }
  func.func @transform_3(%arg0: i32, %arg1: i32) -> (i32, i32) {
    %c0_i32 = arith.constant 0 : i32
    %c0_i32_0 = arith.constant 0 : i32
    %c0_i32_1 = arith.constant 0 : i32
    return %c0_i32, %c0_i32_0 : i32, i32
  }
  func.func @transform_4(%arg0: i32, %arg1: i32) -> (i32, i32, i32) {
    %c0_i32 = arith.constant 0 : i32
    %c0_i32_0 = arith.constant 0 : i32
    %c0_i32_1 = arith.constant 0 : i32
    %c0_i32_2 = arith.constant 0 : i32
    return %c0_i32, %c0_i32_0, %c0_i32_1 : i32, i32, i32
  }
  func.func @transform_5(%arg0: i32, %arg1: i32) -> (i32, i32) {
    %c0_i32 = arith.constant 0 : i32
    %c0_i32_0 = arith.constant 0 : i32
    %c0_i32_1 = arith.constant 0 : i32
    return %c0_i32, %c0_i32_0 : i32, i32
  }
  func.func @transform_6(%arg0: i32, %arg1: i32) -> (i32, i32) {
    %c0_i32 = arith.constant 0 : i32
    %c0_i32_0 = arith.constant 0 : i32
    %c0_i32_1 = arith.constant 0 : i32
    return %c0_i32, %c0_i32_0 : i32, i32
  }
  func.func @transform_7(%arg0: i32, %arg1: i32) -> (i32, i32) {
    %c0_i32 = arith.constant 0 : i32
    %c0_i32_0 = arith.constant 0 : i32
    %c0_i32_1 = arith.constant 0 : i32
    return %c0_i32, %c0_i32_0 : i32, i32
  }
  func.func @transform_8(%arg0: i32, %arg1: i32) -> (i32, i32, i32) {
    %c0_i32 = arith.constant 0 : i32
    %c0_i32_0 = arith.constant 0 : i32
    return %arg0, %arg1, %c0_i32 : i32, i32, i32
  }
}

</mosaic_0001>

<bundles_post_ra>
// kernel: bottleneck_pallas.1
= control target key start
LH: loop header
LB: loop body
LE: loop exit
PB: predicated region body
PF: predicated region fallthrough
CT: control target
= control target key end

     0   :  { %s4990_s27 = smov 0   ;;  %s4992_s28 = smov 0   ;;  %s6336_s0 = inlined_call_operand.vmem [shape: f32[2,324,128], index: 0, kind: input, shape index: {}]   ;;  %s6337_s1 = inlined_call_operand.vmem [shape: f32[324,1], index: 1, kind: input, shape index: {}]   ;;  %s6338_s2 = inlined_call_operand.vmem [shape: bf16[128,128], index: 2, kind: input, shape index: {}]   ;;  %s6339_s3 = inlined_call_operand.vmem [shape: f32[1,128], index: 3, kind: input, shape index: {}]   ;;  %s6340_s4 = inlined_call_operand.vmem [shape: bf16[9,128,128], index: 4, kind: input, shape index: {}]   ;;  %s6341_s5 = inlined_call_operand.vmem [shape: f32[1,128], index: 5, kind: input, shape index: {}]   ;;  %s6342_s6 = inlined_call_operand.vmem [shape: bf16[128,128], index: 6, kind: input, shape index: {}]   ;;  %s6343_s7 = inlined_call_operand.vmem [shape: f32[1,128], index: 7, kind: input, shape index: {}]   ;;  %s6344_s8 = inlined_call_operand.vmem [shape: f32[2,288,128], index: 8, kind: output, shape index: {}]  }
   0x1   :  { %s4994_s29 = smov 0   ;;  %s4996_s30 = smov 0  }
   0x2   :  { %s4998_s9 = smov 0  }
   0x3 LB: > { %s27_s10 = sadd.s32 1, %s4932_s29  ;;  %s30_s11 = sadd.s32 1, %s4936_s30  ;;  %s4940_s9 = sphi %s4998_s9, %s18_s9   ;;  %s4936_s30 = sphi %s4996_s30, %s6348_s30   ;;  %s4932_s29 = sphi %s4994_s29, %s6347_s29   ;;  %s4928_s28 = sphi %s4992_s28, %s6346_s28   ;;  %s4924_s27 = sphi %s4990_s27, %s6345_s27  }
   0x4   : > { %p28_p0 = scmp.ge.s32.totalorder %s27_s10, 2  ;;  %p3578_p1 = scmp.ge.s32.totalorder %s4940_s9, 1 }
   0x5   : > { %p276_p2 = scmp.lt.s32.totalorder %s4940_s9, 5 }
   0x6   : > { %s6350_s10 = smov (%p28_p0, %s27_s10), 0  ;;  %s6352_s11 = smov (!%p28_p0, %s30_s11), %s4936_s30 }
   0x7   : > { %p277_p3 = pnand %p3578_p1, %p276_p2  ;;  %p32_p4 = scmp.ge.s32.totalorder %s6352_s11, 2 }
   0x8   : > { %p314_p5 = scmp.lt.s32.totalorder (!%p277_p3), %s4928_s28, 1  ;;  %s330_s16 = smul.u32 (!%p277_p3), 144, %s4924_s27 }
   0x9   : > { %s6354_s11 = smov (%p32_p4, %s6352_s11), 0  ;;  %280 = sbr.rel (%p277_p3) target bundleno = 1032 (0x408), region = 52 }
   0xa   : > { %s5048_s13 = scalar_lea.vmem (!%p277_p3), %s6337_s1, %s330_s16  ;;  %s319_s18 = smul.u32 (!%p277_p3), 18, %s4924_s27 }
   0xc   : > { %p322_p6 = scmp.lt.s32.totalorder (!%p277_p3), %s319_s18, 35 }
   0xe   : > { %v4779_v0 = vld [vmem:[%s6338_s2 + $0x38] sm:$0xff]   ;;  %v4780_v1 = vld [vmem:[%s6338_s2 + $0x30] sm:$0xff]   ;;  %s6356_s28 = smov (!%p314_p5, %s4928_s28), 1  ;;  %v4781_v2 = vld [vmem:[%s6338_s2 + $0x28] sm:$0xff]   ;;  %v4942_v3 = vmov 0   ;;  %v4943_v38 = vmov 0.0  }
   0xf   : > { %4156 = vmatprep.subr.bf16.mxu0 %v4779_v0  ;;  %s4732_s19 = smul.u32 328, %s6356_s28  ;;  %4777 = vset.pattern.permute.xlu0 %v4942_v3  ;;  %v4782_v4 = vld [vmem:[%s6338_s2 + $0x20] sm:$0xff]   ;;  %v4783_v8 = vld [vmem:[%s6338_s2 + $0x18] sm:$0xff]   ;;  %v591_v10 = vld [vmem:[%s5048_s13 + $0x8] sm:$0xff]  ;;  %vm4944_vm0 = vmmov 0   ;;  %vm1391_vm1 = vcmask 1046528  }
  0x10   : > { %4157 = vmatpush3.bf16.msra.mxu0 %v4779_v0  ;;  %4778 = vset.pattern.permute.xlu1 %v4942_v3  ;;  %v590_v9 = vld [vmem:[%s5048_s13] sm:$0xff]  ;;  %v592_v11 = vld [vmem:[%s5048_s13 + $0x10] sm:$0xff]  ;;  %v593_v13 = vld [vmem:[%s5048_s13 + $0x18] sm:$0xff]  ;;  %vm969_vm2 = vsmask.f32 7424  ;;  %vm2186_vm3 = vcmask 1045504  }
  0x11   : > { %4158 = vmatprep.subr.bf16.mxu0 %v4780_v1  ;;  %s318_s22 = scalar_lea.vmem %s6336_s0, %s4732_s19  ;;  %615 = vperm.xlu0 %4777, %v590_v9   ;;  %v4784_v12 = vld [vmem:[%s6338_s2 + $0x10] sm:$0xff]   ;;  %v594_v14 = vld [vmem:[%s5048_s13 + $0x20] sm:$0xff]  ;;  %v4785_v15 = vld [vmem:[%s6338_s2 + $0x8] sm:$0xff]   ;;  %vm1895_vm4 = vsmask.f32 6400  ;;  %vm2981_vm5 = vcmask 1044480  }
  0x12   : > { %s5038_s23 = scalar_lea.vmem %s318_s22, %s330_s16  ;;  %625 = vperm.xlu1 %4778, %v592_v11   ;;  %v595_v16 = vld [vmem:[%s5048_s13 + $0x28] sm:$0xff]  ;;  %v4786_v17 = vld [vmem:[%s6338_s2] sm:$0xff]   ;;  %v596_v18 = vld [vmem:[%s5048_s13 + $0x30] sm:$0xff]  ;;  %4196 = vmatprep.subr.bf16.mxu1 %v4943_v38  ;;  %vm2690_vm6 = vsmask.f32 5376  ;;  %s4733_s19 = smul.u32 36, %s6356_s28 }
  0x13   : > { %v332_v5 = vld [vmem:[%s5038_s23] sm:$0xff]  ;;  %v333_v6 = vld [vmem:[%s5038_s23 + $0x8] sm:$0xff]  ;;  %v597_v19 = vld [vmem:[%s5048_s13 + $0x38] sm:$0xff]  ;;  %4212 = vmatprep.mubr.msk.bf16.mxu1 %vm4944_vm0, %v4943_v38  ;;  %s6358_s18 = smov (!%p322_p6, %s319_s18), 35 }
  0x14   : > { %4159 = vmatpush3.bf16.msra.mxu0 %v4780_v1  ;;  %v355_v7 = vpack.c.bf16 %v333_v6, %v332_v5  ;;  %v334_v20 = vld [vmem:[%s5038_s23 + $0x10] sm:$0xff]  ;;  %v335_v21 = vld [vmem:[%s5038_s23 + $0x18] sm:$0xff]  ;;  %v598_v22 = vld [vmem:[%s5048_s13 + $0x40] sm:$0xff]  ;;  %s325_s20 = sadd.s32 %s4733_s19, %s6358_s18 }
  0x15   : > { %4160 = vmatprep.subr.bf16.mxu0 %v4781_v2  ;;  %620 = vperm.xlu0 %4777, %v591_v10   ;;  %v336_v23 = vld [vmem:[%s5038_s23 + $0x20] sm:$0xff]  ;;  %v337_v24 = vld [vmem:[%s5038_s23 + $0x28] sm:$0xff]  ;;  %v600_v26 = vld [vmem:[%s5048_s13 + $0x50] sm:$0xff]  ;;  %v356_v27 = vpack.c.bf16 %v335_v21, %v334_v20  ;;  %s3580_s24 = sshll.u32 %s325_s20, 3 }
  0x16   : > { %4172 = vmatprep.mubr.bf16.mxu0 %v355_v7  ;;  %630 = vperm.xlu1 %4778, %v593_v13   ;;  %v599_v25 = vld [vmem:[%s5048_s13 + $0x48] sm:$0xff]  ;;  %v357_v28 = vpack.c.bf16 %v337_v24, %v336_v23  ;;  %v601_v29 = vld [vmem:[%s5048_s13 + $0x58] sm:$0xff]  ;;  %v338_v30 = vld [vmem:[%s5038_s23 + $0x30] sm:$0xff]  ;;  %s6267_s27 = scalar_lea.vmem %s6344_s8, %s3580_s24 }
  0x17   : > { %v339_v31 = vld [vmem:[%s5038_s23 + $0x38] sm:$0xff]  ;;  %v602_v32 = vld [vmem:[%s5048_s13 + $0x60] sm:$0xff]  ;;  %v341_v34 = vld [vmem:[%s5038_s23 + $0x48] sm:$0xff] }
  0x18   : > { %4161 = vmatpush3.bf16.msra.mxu0 %v4781_v2  ;;  %v340_v33 = vld [vmem:[%s5038_s23 + $0x40] sm:$0xff]  ;;  %v604_v35 = vld [vmem:[%s5048_s13 + $0x70] sm:$0xff]  ;;  %v603_v36 = vld [vmem:[%s5048_s13 + $0x68] sm:$0xff]  ;;  %v358_v37 = vpack.c.bf16 %v339_v31, %v338_v30 }
  0x19   : > { %4162 = vmatprep.subr.bf16.mxu0 %v4782_v4  ;;  %635 = vperm.xlu0 %4777, %v594_v14   ;;  %v359_v39 = vpack.c.bf16 %v341_v34, %v340_v33  ;;  %v605_v40 = vld [vmem:[%s5048_s13 + $0x78] sm:$0xff]  ;;  %v342_v41 = vld [vmem:[%s5038_s23 + $0x50] sm:$0xff]  ;;  %v606_v43 = vld [vmem:[%s5048_s13 + $0x80] sm:$0xff] }
  0x1a   : > { %640 = vperm.xlu1 %4778, %v595_v16   ;;  %v343_v42 = vld [vmem:[%s5038_s23 + $0x58] sm:$0xff]  ;;  %v344_v45 = vld [vmem:[%s5038_s23 + $0x60] sm:$0xff]  ;;  %v345_v46 = vld [vmem:[%s5038_s23 + $0x68] sm:$0xff] }
  0x1b   : > { %v4787_v44 = vld [vmem:[%s6340_s4 + $0x38] sm:$0xff]   ;;  %v607_v47 = vld [vmem:[%s5048_s13 + $0x88] sm:$0xff]  ;;  %v608_v48 = vld [vmem:[%s5048_s13 + $0x90] sm:$0xff]  ;;  %v360_v51 = vpack.c.bf16 %v343_v42, %v342_v41  ;;  %v361_v52 = vpack.c.bf16 %v345_v46, %v344_v45 }
  0x1c   : > { %4163 = vmatpush3.bf16.msra.mxu0 %v4782_v4  ;;  %v4788_v49 = vld [vmem:[%s6340_s4 + $0x30] sm:$0xff]   ;;  %v4789_v50 = vld [vmem:[%s6340_s4 + $0x78] sm:$0xff]   ;;  %v610_v56 = vld [vmem:[%s5048_s13 + $0xa0] sm:$0xff] }
  0x1d   : > { %4164 = vmatprep.subr.bf16.mxu0 %v4783_v8  ;;  %645 = vperm.xlu0 %4777, %v596_v18   ;;  %v609_v53 = vld [vmem:[%s5048_s13 + $0x98] sm:$0xff]  ;;  %v346_v54 = vld [vmem:[%s5038_s23 + $0x70] sm:$0xff]  ;;  %v348_v57 = vld [vmem:[%s5038_s23 + $0x80] sm:$0xff] }
  0x1e   : > { %650 = vperm.xlu1 %4778, %v597_v19   ;;  %4197 = vmatpush3.bf16.msra.mxu1 %v4789_v50  ;;  %v347_v55 = vld [vmem:[%s5038_s23 + $0x78] sm:$0xff]  ;;  %v349_v58 = vld [vmem:[%s5038_s23 + $0x88] sm:$0xff]  ;;  %v612_v60 = vld [vmem:[%s5048_s13 + $0xb0] sm:$0xf] }
  0x1f   : > { %4198 = vmatprep.subr.bf16.mxu1 %v4943_v38  ;;  %v611_v59 = vld [vmem:[%s5048_s13 + $0xa8] sm:$0xff]  ;;  %v362_v61 = vpack.c.bf16 %v347_v55, %v346_v54  ;;  %v363_v62 = vpack.c.bf16 %v349_v58, %v348_v57  ;;  %v350_v63 = vld [vmem:[%s5038_s23 + $0x90] sm:$0xff]  ;;  %v351_v0 = vld [vmem:[%s5038_s23 + $0x98] sm:$0xff] }
  0x20   : > { %4165 = vmatpush3.bf16.msra.mxu0 %v4783_v8  ;;  %v352_v1 = vld [vmem:[%s5038_s23 + $0xa0] sm:$0xff]  ;;  %v353_v2 = vld [vmem:[%s5038_s23 + $0xa8] sm:$0xff]  ;;  %v364_v3 = vpack.c.bf16 %v351_v0, %v350_v63  ;;  %v354_v5 = vld [vmem:[%s5038_s23 + $0xb0] sm:$0xf] }
  0x21   : > { %4166 = vmatprep.subr.bf16.mxu0 %v4784_v12  ;;  %655 = vperm.xlu0 %4777, %v598_v22   ;;  %v365_v4 = vpack.c.bf16 %v353_v2, %v352_v1  ;;  %v366_v6 = vpack.c.bf16 %v354_v5, %v354_v5  ;;  %v4790_v7 = vld [vmem:[%s6340_s4 + $0x28] sm:$0xff]   ;;  %v4791_v8 = vld [vmem:[%s6340_s4 + $0x70] sm:$0xff]   ;;  %v4792_v9 = vld [vmem:[%s6340_s4 + $0x20] sm:$0xff]  }
  0x22   : > { %660 = vperm.xlu1 %4778, %v599_v25   ;;  %4199 = vmatpush3.bf16.msra.mxu1 %v4791_v8  ;;  %v4793_v10 = vld [vmem:[%s6340_s4 + $0x68] sm:$0xff]   ;;  %v4794_v11 = vld [vmem:[%s6340_s4 + $0x18] sm:$0xff]   ;;  %v4796_v13 = vld [vmem:[%s6340_s4 + $0x10] sm:$0xff]  }
  0x23   : > { %4200 = vmatprep.subr.bf16.mxu1 %v4943_v38  ;;  %v4797_v14 = vld [vmem:[%s6340_s4 + $0x58] sm:$0xff]   ;;  %v4799_v16 = vld [vmem:[%s6340_s4 + $0x50] sm:$0xff]   ;;  %v4801_v18 = vld [vmem:[%s6340_s4 + $0x48] sm:$0xff]  }
  0x24   : > { %4167 = vmatpush3.bf16.msra.mxu0 %v4784_v12  ;;  %v4795_v12 = vld [vmem:[%s6340_s4 + $0x60] sm:$0xff]  }
  0x25   : > { %4168 = vmatprep.subr.bf16.mxu0 %v4785_v15  ;;  %665 = vperm.xlu0 %4777, %v600_v26   ;;  %v4803_v19 = vld [vmem:[%s6340_s4 + $0x40] sm:$0xff]  }
  0x26   : > { %670 = vperm.xlu1 %4778, %v601_v29   ;;  %4201 = vmatpush3.bf16.msra.mxu1 %v4793_v10 }
  0x27   : > { %4202 = vmatprep.subr.bf16.mxu1 %v4943_v38 }
  0x28   : > { %4169 = vmatpush3.bf16.msra.mxu0 %v4785_v15  ;;  %v4798_v15 = vld [vmem:[%s6340_s4 + $0x8] sm:$0xff]  }
  0x29   : > { %4170 = vmatprep.subr.bf16.mxu0 %v4786_v17  ;;  %675 = vperm.xlu0 %4777, %v602_v32  }
  0x2a   : > { %680 = vperm.xlu1 %4778, %v603_v36   ;;  %4203 = vmatpush3.bf16.msra.mxu1 %v4795_v12 }
  0x2b   : > { %4204 = vmatprep.subr.bf16.mxu1 %v4943_v38 }
  0x2c   : > { %4171 = vmatpush3.bf16.msra.mxu0 %v4786_v17  ;;  %v4800_v17 = vld [vmem:[%s6340_s4] sm:$0xff]  }
  0x2d   : > { %4248 = vmatprep.subr.bf16.mxu0 %v4943_v38  ;;  %685 = vperm.xlu0 %4777, %v604_v35  }
  0x2e   : > { %690 = vperm.xlu1 %4778, %v605_v40   ;;  %4205 = vmatpush3.bf16.msra.mxu1 %v4797_v14 }
  0x2f   : > { %4173 = vmatmul.mubr.bf16.vlgmr.msra.gmra.mxu0 %v356_v27  ;;  %4206 = vmatprep.subr.bf16.mxu1 %v4943_v38  ;;  %v5179_v27 = vld [vmem:[%s6339_s3] ss:$0 sm:$0xff] }
  0x30   : > { %4176 = vmatprep.mubr.bf16.mxu0 %v357_v28  ;;  %4249 = vmatpush3.bf16.msra.mxu0 %v4787_v44 }
  0x31   : > { %4250 = vmatprep.subr.bf16.mxu0 %v4943_v38  ;;  %695 = vperm.xlu0 %4777, %v606_v43  }
  0x32   : > { %700 = vperm.xlu1 %4778, %v607_v47   ;;  %4207 = vmatpush3.bf16.msra.mxu1 %v4799_v16 }
  0x33   : > { %4208 = vmatprep.subr.bf16.mxu1 %v4943_v38 }
  0x34   : > { %4251 = vmatpush3.bf16.msra.mxu0 %v4788_v49 }
  0x35   : > { %4252 = vmatprep.subr.bf16.mxu0 %v4943_v38  ;;  %705 = vperm.xlu0 %4777, %v608_v48  }
  0x36   : > { %710 = vperm.xlu1 %4778, %v609_v53   ;;  %4209 = vmatpush3.bf16.msra.mxu1 %v4801_v18 }
  0x37   : > { %4177 = vmatmul.mubr.bf16.gmra.mxu0 %v358_v37  ;;  %4210 = vmatprep.subr.bf16.mxu1 %v4943_v38 }
  0x38   : > { %4180 = vmatprep.mubr.bf16.mxu0 %v359_v39  ;;  %4253 = vmatpush3.bf16.msra.mxu0 %v4790_v7 }
  0x39   : > { %715 = vperm.xlu0 %4777, %v610_v56   ;;  %4254 = vmatprep.subr.bf16.mxu0 %v4943_v38 }
  0x3a   : > { %720 = vperm.xlu1 %4778, %v611_v59   ;;  %4211 = vmatpush3.bf16.msra.mxu1 %v4803_v19 }
  0x3b   : > { %4300 = vmatprep.subr.bf16.mxu1 %v4943_v38 }
  0x3c   : > { %4255 = vmatpush3.bf16.msra.mxu0 %v4792_v9 }
  0x3d   : > { %725 = vperm.xlu0 %4777, %v612_v60   ;;  %4256 = vmatprep.subr.bf16.mxu0 %v4943_v38 }
  0x3f   : > { %4181 = vmatmul.mubr.bf16.gmra.mxu0 %v360_v51 }
  0x40   : > { %4184 = vmatprep.mubr.bf16.mxu0 %v361_v52  ;;  %4257 = vmatpush3.bf16.msra.mxu0 %v4794_v11 }
  0x41   : > { %4258 = vmatprep.subr.bf16.mxu0 %v4943_v38 }
  0x44   : > { %4259 = vmatpush3.bf16.msra.mxu0 %v4796_v13 }
  0x45   : > { %4260 = vmatprep.subr.bf16.mxu0 %v4943_v38 }
  0x47   : > { %4185 = vmatmul.mubr.bf16.gmra.mxu0 %v362_v61 }
  0x48   : > { %4188 = vmatprep.mubr.bf16.mxu0 %v363_v62  ;;  %4261 = vmatpush3.bf16.msra.mxu0 %v4798_v15 }
  0x49   : > { %4262 = vmatprep.subr.bf16.mxu0 %v4943_v38 }
  0x4c   : > { %4263 = vmatpush3.bf16.msra.mxu0 %v4800_v17 }
  0x4d   : > { %4352 = vmatprep.subr.bf16.mxu0 %v4943_v38 }
  0x4f   : > { %4189 = vmatmul.mubr.bf16.gmra.mxu0 %v364_v3 }
  0x50   : > { %4192 = vmatprep.mubr.bf16.mxu0 %v365_v4 }
  0x57   : > { %4193 = vmatmul.mubr.bf16.gmra.mxu0 %v366_v6 }
  0x58   : > { %4264 = vmatprep.mubr.msk.bf16.mxu0 %vm4944_vm0, %v4943_v38 }
  0x8c   : > { %v616_v20 = vpop.permute.xlu0 %615 }
  0x8d   : > { %v626_v22 = vpop.permute.xlu1 %625 }
  0x90   : > { %v621_v21 = vpop.permute.xlu0 %620 }
  0x91   : > { %v631_v24 = vpop.permute.xlu1 %630 }
  0x94   : > { %v636_v23 = vpop.permute.xlu0 %635 }
  0x95   : > { %v641_v26 = vpop.permute.xlu1 %640 }
  0x98   : > { %v646_v25 = vpop.permute.xlu0 %645 }
  0x99   : > { %v651_v33 = vpop.permute.xlu1 %650 }
  0x9c   : > { %v5182_v30 = vpop.permute.xlu0 %655 }
  0x9d   : > { %v5188_v48 = vpop.permute.xlu1 %660 }
  0xa0   : > { %v666_v42 = vpop.permute.xlu0 %665 }
  0xa1   : > { %v671_v63 = vpop.permute.xlu1 %670 }
  0xa4   : > { %v5192_v58 = vpop.permute.xlu0 %675 }
  0xa5   : > { %v5202_v16 = vpop.permute.xlu1 %680 }
  0xa8   : > { %v5197_v10 = vpop.permute.xlu0 %685 }
  0xef   : > { %v4174_v28 = vpop.f32.mrf.mxu0 }
  0xf0   : > { %v481_v29 = vadd.f32 %v4174_v28, %v5179_v27 }
  0xf1   : > { %v472_v31 = vpop.f32.mrf.mxu0 }
  0xf2   : > { %v473_v32 = vadd.f32 %v5179_v27, %v472_v31  ;;  %v568_v35 = vmax.f32 %v481_v29, 0.0 }
  0xf3   : > { %v4175_v34 = vpop.f32.mrf.mxu0 }
  0xf4   : > { %v484_v36 = vadd.f32 %v4175_v34, %v5179_v27  ;;  %v566_v39 = vmax.f32 %v473_v32, 0.0  ;;  %v730_v44 = vmul.f32 %v626_v22, %v568_v35  ;;  %v5210_v35 = vpop.permute.xlu0 %695 }
  0xf5   : > { %v475_v37 = vpop.f32.mrf.mxu0 }
  0xf6   : > { %v569_v40 = vmax.f32 %v484_v36, 0.0  ;;  %v476_v41 = vadd.f32 %v5179_v27, %v475_v37  ;;  %v728_v50 = vmul.f32 %v616_v20, %v566_v39  ;;  %v4813_v20 = vld [vmem:[%s6340_s4 + $0xf8] sm:$0xff]   ;;  %v4815_v39 = vld [vmem:[%s6340_s4 + $0xf0] sm:$0xff]  }
  0xf7   : > { %v4178_v43 = vpop.f32.mrf.mxu0 }
  0xf8   : > { %v731_v45 = vmul.f32 %v631_v24, %v569_v40  ;;  %v567_v46 = vmax.f32 %v476_v41, 0.0  ;;  %v497_v47 = vadd.f32 %v4178_v43, %v5179_v27 }
  0xf9   : > { %v488_v49 = vpop.f32.mrf.mxu0 }
  0xfa   : > { %v3909_v51 = vpack.c.bf16 %v731_v45, %v730_v44  ;;  %v729_v52 = vmul.f32 %v621_v21, %v567_v46  ;;  %v489_v53 = vadd.f32 %v5179_v27, %v488_v49  ;;  %v572_v56 = vmax.f32 %v497_v47, 0.0  ;;  %v691_v46 = vpop.permute.xlu1 %690 }
  0xfb   : > { %v4179_v54 = vpop.f32.mrf.mxu0 }
  0xfc   : > { %3956 = vst [vmem:[#allocation2 + $0x8] sm:$0xff] %v3909_v51   ;;  %v3904_v55 = vpack.c.bf16 %v729_v52, %v728_v50  ;;  %v500_v57 = vadd.f32 %v4179_v54, %v5179_v27  ;;  %v570_v60 = vmax.f32 %v489_v53, 0.0  ;;  %v734_v1 = vmul.f32 %v646_v25, %v572_v56  ;;  %v4805_v51 = vld [vmem:[%s6340_s4 + $0xb8] sm:$0xff]  }
  0xfd   : > { %v491_v59 = vpop.f32.mrf.mxu0 }
  0xfe   : > { %3905 = vst [vmem:[#allocation2] sm:$0xff] %v3904_v55   ;;  %v573_v61 = vmax.f32 %v500_v57, 0.0  ;;  %v492_v62 = vadd.f32 %v5179_v27, %v491_v59  ;;  %v732_v6 = vmul.f32 %v636_v23, %v570_v60 }
  0xff   : > { %v4182_v0 = vpop.f32.mrf.mxu0 }
 0x100   : > { %v735_v2 = vmul.f32 %v651_v33, %v573_v61  ;;  %v571_v3 = vmax.f32 %v492_v62, 0.0  ;;  %v513_v4 = vadd.f32 %v4182_v0, %v5179_v27  ;;  %v706_v62 = vpop.permute.xlu0 %705 }
 0x101   : > { %v504_v5 = vpop.f32.mrf.mxu0 }
 0x102   : > { %v3919_v7 = vpack.c.bf16 %v735_v2, %v734_v1  ;;  %v733_v8 = vmul.f32 %v641_v26, %v571_v3  ;;  %v505_v9 = vadd.f32 %v5179_v27, %v504_v5  ;;  %v576_v11 = vmax.f32 %v513_v4, 0.0  ;;  %v4817_v2 = vld [vmem:[%s6340_s4 + $0xe8] sm:$0xff]  }
 0x103   : > { %v4183_v12 = vpop.f32.mrf.mxu0  ;;  %v5200_v15 = vld [vmem:[#allocation2 + $0x8] sm:$0xff]  }
 0x104   : > { %3958 = vst [vmem:[#allocation2 + $0x18] sm:$0xff] %v3919_v7   ;;  %v3914_v13 = vpack.c.bf16 %v733_v8, %v732_v6  ;;  %v516_v14 = vadd.f32 %v4183_v12, %v5179_v27  ;;  %v574_v21 = vmax.f32 %v505_v9, 0.0  ;;  %v738_v26 = vmul.f32 %v666_v42, %v576_v11  ;;  %v701_v7 = vpop.permute.xlu1 %700  ;;  %v4807_v11 = vld [vmem:[%s6340_s4 + $0xb0] sm:$0xff]  }
 0x105   : > { %v507_v17 = vpop.f32.mrf.mxu0  ;;  %v869_v18 = vld [vmem:[#allocation2] sm:$0xf]  ;;  %v870_v19 = vld [vmem:[#allocation2 + $0x4] sm:$0xf]  ;;  %v978_v34 = vshll.u32 %v5200_v15, 16  ;;  %v1393_v41 = vrot.slane %v5200_v15, 1 }
 0x106   : > { %3957 = vst [vmem:[#allocation2 + $0x10] sm:$0xff] %v3914_v13   ;;  %v577_v22 = vmax.f32 %v516_v14, 0.0  ;;  %v508_v23 = vadd.f32 %v5179_v27, %v507_v17  ;;  %v3629_v24 = vcombine.low %v869_v18, %v870_v19  ;;  %v1370_v25 = vld [vmem:[#allocation2] sm:$0xe]  ;;  %v736_v42 = vmul.f32 %v5182_v30, %v574_v21 }
 0x107   : > { %v4186_v28 = vpop.f32.mrf.mxu0  ;;  %v3671_v29 = vcombine.low %v1370_v25, %v870_v19  ;;  %v980_v54 = vrot.slane %v978_v34, 1  ;;  %v982_v17 = vshrl.u32 %v5200_v15, 16 }
 0x108   : > { %v739_v31 = vmul.f32 %v671_v63, %v577_v22  ;;  %v575_v32 = vmax.f32 %v508_v23, 0.0  ;;  %v529_v33 = vadd.f32 %v4186_v28, %v5179_v27  ;;  %4265 = vmatmul.mubr.bf16.vlgmr.msra.gmra.mxu0 %v3629_v24  ;;  %v973_v37 = vshll.u32 %v3629_v24, 16  ;;  %v5263_v23 = vpop.permute.xlu0 %715 }
 0x109   : > { %v520_v36 = vpop.f32.mrf.mxu0  ;;  %4268 = vmatprep.mubr.msk.bf16.mxu0 %vm4944_vm0, %v4943_v38  ;;  %4353 = vmatpush3.bf16.msra.mxu0 %v4813_v20  ;;  %v1392_v40 = vrot.slane %v3671_v29, 1  ;;  %v971_v49 = vshrl.u32 %v3629_v24, 16 }
 0x10a   : > { %v3929_v43 = vpack.c.bf16 %v739_v31, %v738_v26  ;;  %v737_v44 = vmul.f32 %v5188_v48, %v575_v32  ;;  %v521_v45 = vadd.f32 %v5179_v27, %v520_v36  ;;  %4354 = vmatprep.subr.bf16.mxu0 %v4943_v38  ;;  %v975_v50 = vrot.slane %v973_v37, 1  ;;  %v4809_v32 = vld [vmem:[%s6340_s4 + $0xa8] sm:$0xff]  }
 0x10b   : > { %v4187_v47 = vpop.f32.mrf.mxu0  ;;  %v5228_v52 = vsel %vm1391_vm1, %v1392_v40, %v1393_v41  ;;  %v580_v48 = vmax.f32 %v529_v33, 0.0  ;;  %v5259_v20 = vld [vmem:[#allocation2 + $0x18] sm:$0xff]   ;;  %v984_v26 = vor.u32 %v982_v17, %v980_v54  ;;  %v711_v33 = vpop.permute.xlu1 %710 }
 0x10c   : > { %3960 = vst [vmem:[#allocation2 + $0x28] sm:$0xff] %v3929_v43   ;;  %v3924_v30 = vpack.c.bf16 %v737_v44, %v736_v42  ;;  %v532_v53 = vadd.f32 %v4187_v47, %v5179_v27  ;;  %v578_v55 = vmax.f32 %v521_v45, 0.0  ;;  %v976_v57 = vor.u32 %v975_v50, %v971_v49 }
 0x10d   : > { %v523_v56 = vpop.f32.mrf.mxu0  ;;  %v5231_v59 = vld [vmem:[#allocation2 + $0x10] sm:$0xff]   ;;  %4355 = vmatpush3.bf16.msra.mxu0 %v4815_v39  ;;  %v742_v3 = vmul.f32 %v5197_v10, %v580_v48  ;;  %v1397_v39 = vrot.slane %v5259_v20, 1  ;;  %v994_v47 = vshll.u32 %v5259_v20, 16 }
 0x10e   : > { %3959 = vst [vmem:[#allocation2 + $0x20] sm:$0xff] %v3924_v30   ;;  %v581_v60 = vmax.f32 %v532_v53, 0.0  ;;  %v524_v61 = vadd.f32 %v5179_v27, %v523_v56  ;;  %4356 = vmatprep.subr.bf16.mxu0 %v4943_v38  ;;  %v981_v0 = vsel %vm969_vm2, %v976_v57, %v980_v54  ;;  %v986_v1 = vshll.u32 %v5231_v59, 16  ;;  %v4823_v53 = vld [vmem:[%s6340_s4 + $0xd0] sm:$0xff]   ;;  %v726_v54 = vpop.permute.xlu0 %725 }
 0x10f   : > { %v4190_v63 = vpop.f32.mrf.mxu0  ;;  %4213 = vmatmul.mubr.bf16.vlgmr.msra.gmra.mxu1 %v981_v0  ;;  %v740_v8 = vmul.f32 %v5192_v58, %v578_v55  ;;  %v1395_v10 = vrot.slane %v5231_v59, 1  ;;  %v4819_v58 = vld [vmem:[%s6340_s4 + $0xe0] sm:$0xff]   ;;  %v1591_v0 = vld [vmem:[#allocation2 + $0x8] sm:$0xe] }
 0x110   : > { %v743_v4 = vmul.f32 %v691_v46, %v581_v60  ;;  %v579_v5 = vmax.f32 %v524_v61, 0.0  ;;  %v545_v6 = vadd.f32 %v4190_v63, %v5179_v27  ;;  %4269 = vmatmul.mubr.bf16.gmra.mxu0 %v5200_v15  ;;  %4301 = vmatpush3.bf16.msra.mxu1 %v4805_v51  ;;  %v988_v19 = vrot.slane %v986_v1, 1  ;;  %v4821_v15 = vld [vmem:[%s6340_s4 + $0xd8] sm:$0xff]   ;;  %v2165_v1 = vld [vmem:[#allocation2 + $0x8] sm:$0xc] }
 0x111   : > { %v536_v9 = vpop.f32.mrf.mxu0  ;;  %4216 = vmatprep.mubr.msk.bf16.mxu1 %vm4944_vm0, %v4943_v38  ;;  %4272 = vmatprep.mubr.msk.bf16.mxu0 %vm4944_vm0, %v4943_v38  ;;  %v5268_v28 = vsel %vm1391_vm1, %v1393_v41, %v1395_v10  ;;  %v990_v46 = vshrl.u32 %v5231_v59, 16  ;;  %v5292_v49 = vsel %vm1391_vm1, %v1395_v10, %v1397_v39  ;;  %v4814_v63 = vld [vmem:[%s6340_s4 + $0x98] sm:$0xff]  }
 0x112   : > { %v3939_v12 = vpack.c.bf16 %v743_v4, %v742_v3  ;;  %v741_v13 = vmul.f32 %v5202_v16, %v579_v5  ;;  %v537_v14 = vadd.f32 %v5179_v27, %v536_v9  ;;  %4302 = vmatprep.subr.bf16.mxu1 %v4943_v38  ;;  %4357 = vmatpush3.bf16.msra.mxu0 %v4817_v2  ;;  %v584_v21 = vmax.f32 %v545_v6, 0.0 }
 0x113   : > { %v4191_v18 = vpop.f32.mrf.mxu0  ;;  %4358 = vmatprep.subr.bf16.mxu0 %v4943_v38  ;;  %v989_v36 = vsel %vm969_vm2, %v984_v26, %v988_v19  ;;  %v992_v56 = vor.u32 %v990_v46, %v988_v19  ;;  %v5303_v57 = vld [vmem:[#allocation2 + $0x28] sm:$0xff]   ;;  %v996_v3 = vrot.slane %v994_v47, 1  ;;  %v998_v19 = vshrl.u32 %v5259_v20, 16 }
 0x114   : > { %3962 = vst [vmem:[#allocation2 + $0x38] sm:$0xff] %v3939_v12   ;;  %v3934_v16 = vpack.c.bf16 %v741_v13, %v740_v8  ;;  %v548_v22 = vadd.f32 %v4191_v18, %v5179_v27  ;;  %v582_v24 = vmax.f32 %v537_v14, 0.0  ;;  %4303 = vmatpush3.bf16.msra.mxu1 %v4807_v11  ;;  %v746_v40 = vmul.f32 %v706_v62, %v584_v21  ;;  %v4825_v12 = vld [vmem:[%s6340_s4 + $0xc8] sm:$0xff]   ;;  %v721_v18 = vpop.permute.xlu1 %720 }
 0x115   : > { %v539_v25 = vpop.f32.mrf.mxu0  ;;  %4304 = vmatprep.subr.bf16.mxu1 %v4943_v38  ;;  %v5276_v37 = vld [vmem:[#allocation2 + $0x20] sm:$0xff]   ;;  %v997_v11 = vsel %vm969_vm2, %v992_v56, %v996_v3  ;;  %v1401_v13 = vrot.slane %v5303_v57, 1 }
 0x116   : > { %3961 = vst [vmem:[#allocation2 + $0x30] sm:$0xff] %v3934_v16   ;;  %v585_v29 = vmax.f32 %v548_v22, 0.0  ;;  %v540_v31 = vadd.f32 %v5179_v27, %v539_v25  ;;  %4359 = vmatpush3.bf16.msra.mxu0 %v4819_v58  ;;  %v744_v44 = vmul.f32 %v5210_v35, %v582_v24  ;;  %v4811_v35 = vld [vmem:[%s6340_s4 + $0xa0] sm:$0xff]   ;;  %v1399_v60 = vrot.slane %v5276_v37, 1 }
 0x117   : > { %v4194_v34 = vpop.f32.mrf.mxu0  ;;  %4217 = vmatmul.mubr.bf16.gmra.mxu1 %v989_v36  ;;  %4360 = vmatprep.subr.bf16.mxu0 %v4943_v38  ;;  %v1002_v10 = vshll.u32 %v5276_v37, 16  ;;  %v1010_v16 = vshll.u32 %v5303_v57, 16  ;;  %v1006_v26 = vshrl.u32 %v5276_v37, 16 }
 0x118   : > { %v747_v41 = vmul.f32 %v711_v33, %v585_v29  ;;  %v583_v42 = vmax.f32 %v540_v31, 0.0  ;;  %v561_v43 = vadd.f32 %v4194_v34, %v5179_v27  ;;  %4273 = vmatmul.mubr.bf16.gmra.mxu0 %v5231_v59  ;;  %4220 = vmatprep.mubr.msk.bf16.mxu1 %vm4944_vm0, %v4943_v38  ;;  %v1592_v59 = vld [vmem:[#allocation2 + $0xc] sm:$0xf]  ;;  %v5313_v5 = vsel %vm1391_vm1, %v1397_v39, %v1399_v60  ;;  %v4826_v29 = vld [vmem:[%s6340_s4 + $0xc0] sm:$0xff]  }
 0x119   : > { %v552_v45 = vpop.f32.mrf.mxu0  ;;  %4276 = vmatprep.mubr.msk.bf16.mxu0 %vm4944_vm0, %v4943_v38  ;;  %4305 = vmatpush3.bf16.msra.mxu1 %v4809_v32  ;;  %v3755_v58 = vcombine.low %v2165_v1, %v1592_v59  ;;  %v5335_v21 = vcombine.low %v1591_v0, %v1592_v59  ;;  %v5338_v22 = vsel %vm1391_vm1, %v1399_v60, %v1401_v13  ;;  %v1004_v32 = vrot.slane %v1002_v10, 1 }
 0x11a   : > { %v3949_v50 = vpack.c.bf16 %v747_v41, %v746_v40  ;;  %v745_v51 = vmul.f32 %v701_v7, %v583_v42  ;;  %v588_v30 = vmax.f32 %v561_v43, 0.0  ;;  %v553_v48 = vadd.f32 %v5179_v27, %v552_v45  ;;  %4306 = vmatprep.subr.bf16.mxu1 %v4943_v38  ;;  %4361 = vmatpush3.bf16.msra.mxu0 %v4821_v15 }
 0x11b   : > { %v4195_v55 = vpop.f32.mrf.mxu0  ;;  %4362 = vmatprep.subr.bf16.mxu0 %v4943_v38  ;;  %v5316_v9 = vld [vmem:[#allocation2 + $0x38] sm:$0xff]   ;;  %v2187_v15 = vrot.slane %v3755_v58, 2  ;;  %v1000_v40 = vor.u32 %v998_v19, %v996_v3  ;;  %v1897_v42 = vshrl.u32 %v5335_v21, 16  ;;  %v1008_v47 = vor.u32 %v1006_v26, %v1004_v32 }
 0x11c   : > { %3964 = vst [vmem:[#allocation2 + $0x48] sm:$0xff] %v3949_v50   ;;  %v3944_v61 = vpack.c.bf16 %v745_v51, %v744_v44  ;;  %v750_v62 = vmul.f32 %v726_v54, %v588_v30  ;;  %v586_v7 = vmax.f32 %v553_v48, 0.0  ;;  %v1405_v31 = vrot.slane %v5316_v9, 1  ;;  %v4822_v44 = vld [vmem:[%s6340_s4 + $0x88] sm:$0xff]   ;;  %v4827_v48 = vld [vmem:[%s6340_s4 + $0x80] sm:$0xff]  }
 0x11d   : > { %v555_v2 = vpop.f32.mrf.mxu0  ;;  %v5310_v4 = vld [vmem:[#allocation2 + $0x30] sm:$0xff]   ;;  %4307 = vmatpush3.bf16.msra.mxu1 %v4811_v35  ;;  %v1005_v46 = vsel %vm969_vm2, %v1000_v40, %v1004_v32  ;;  %v1012_v50 = vrot.slane %v1010_v16, 1  ;;  %v1014_v30 = vshrl.u32 %v5303_v57, 16  ;;  %v5379_v35 = vld [vmem:[#allocation2 + $0x18] sm:$0xff]   ;;  %v1900_v54 = vshll.u32 %v5335_v21, 16  ;;  %v5387_v55 = vld [vmem:[#allocation2 + $0x20] sm:$0xff]  }
 0x11e   : > { %3963 = vst [vmem:[#allocation2 + $0x40] sm:$0xff] %v3944_v61   ;;  %v3900_v6 = vpack.c.bf16 %v750_v62, %v750_v62  ;;  %v556_v8 = vadd.f32 %v5179_v27, %v555_v2  ;;  %4308 = vmatprep.subr.bf16.mxu1 %v4943_v38  ;;  %4363 = vmatpush3.bf16.msra.mxu0 %v4823_v53  ;;  %v5326_v27 = vld [vmem:[#allocation2 + $0x10] sm:$0xff]   ;;  %v1403_v17 = vrot.slane %v5310_v4, 1  ;;  %v1018_v43 = vshll.u32 %v5310_v4, 16 }
 0x11f   : > { %4221 = vmatmul.mubr.bf16.gmra.mxu1 %v997_v11  ;;  %v748_v24 = vmul.f32 %v5263_v23, %v586_v7  ;;  %4364 = vmatprep.subr.bf16.mxu0 %v4943_v38  ;;  %v2188_v39 = vrot.slane %v5326_v27, 2  ;;  %v1899_v56 = vrot.slane %v1897_v42, 1  ;;  %v1905_v59 = vshrl.u32 %v5326_v27, 16  ;;  %v5401_v7 = vld [vmem:[#allocation2 + $0x28] sm:$0xff]  }
 0x120   : > { %866 = vst [vmem:[#allocation2 + $0x58] sm:$0x3] %v3900_v6  ;;  %v587_v14 = vmax.f32 %v556_v8, 0.0  ;;  %4277 = vmatmul.mubr.bf16.gmra.mxu0 %v5259_v20  ;;  %4224 = vmatprep.mubr.msk.bf16.mxu1 %vm4944_vm0, %v4943_v38  ;;  %v4818_v20 = vld [vmem:[%s6340_s4 + $0x90] sm:$0xff]   ;;  %v5354_v33 = vsel %vm1391_vm1, %v1401_v13, %v1403_v17  ;;  %v5358_v36 = vsel %vm1391_vm1, %v1403_v17, %v1405_v31  ;;  %v1908_v60 = vshll.u32 %v5326_v27, 16 }
 0x121   : > { %4280 = vmatprep.mubr.msk.bf16.mxu0 %vm4944_vm0, %v4943_v38  ;;  %4309 = vmatpush3.bf16.msra.mxu1 %v4814_v63  ;;  %v5369_v45 = vsel %vm2186_vm3, %v2187_v15, %v2188_v39  ;;  %v1020_v61 = vrot.slane %v1018_v43, 1  ;;  %v1902_v63 = vrot.slane %v1900_v54, 2  ;;  %v1013_v0 = vsel %vm969_vm2, %v1008_v47, %v1012_v50  ;;  %v5407_v13 = vld [vmem:[#allocation2 + $0x30] sm:$0xff]  }
 0x122   : > { %v749_v25 = vmul.f32 %v721_v18, %v587_v14  ;;  %4310 = vmatprep.subr.bf16.mxu1 %v4943_v38  ;;  %4365 = vmatpush3.bf16.msra.mxu0 %v4825_v12  ;;  %v1016_v1 = vor.u32 %v1014_v30, %v1012_v50  ;;  %v1907_v2 = vrot.slane %v1905_v59, 1  ;;  %v1910_v3 = vrot.slane %v1908_v60, 2 }
 0x123   : > { %v5351_v23 = vld [vmem:[#allocation2 + $0x48] ss:$0 sps:$4 sm:$0x11]   ;;  %4366 = vmatprep.subr.bf16.mxu0 %v4943_v38  ;;  %v1026_v6 = vshll.u32 %v5316_v9, 16  ;;  %v2190_v8 = vrot.slane %v5379_v35, 2  ;;  %v1914_v11 = vshrl.u32 %v5379_v35, 16  ;;  %v1903_v14 = vor.u32 %v1902_v63, %v1899_v56 }
 0x124   : > { %v3954_v34 = vpack.c.bf16 %v749_v25, %v748_v24  ;;  %v1409_v53 = vrot.slane %v5351_v23, 1  ;;  %v1917_v10 = vshll.u32 %v5379_v35, 16  ;;  %v1022_v12 = vshrl.u32 %v5310_v4, 16  ;;  %v5447_v56 = vld [vmem:[#allocation2 + $0x48] sm:$0xff]  }
 0x125   : > { %v5361_v41 = vld [vmem:[#allocation2 + $0x40] sm:$0xff]   ;;  %4311 = vmatpush3.bf16.msra.mxu1 %v4818_v20  ;;  %v1911_v17 = vor.u32 %v1910_v3, %v1907_v2  ;;  %v2192_v58 = vrot.slane %v5387_v55, 2  ;;  %v5411_v18 = vsel %vm2186_vm3, %v2188_v39, %v2190_v8  ;;  %v1916_v19 = vrot.slane %v1914_v11, 1 }
 0x126   : > { %3965 = vst [vmem:[#allocation2 + $0x50] sm:$0xff] %v3954_v34   ;;  %4312 = vmatprep.subr.bf16.mxu1 %v4943_v38  ;;  %4367 = vmatpush3.bf16.msra.mxu0 %v4826_v29  ;;  %v1407_v51 = vrot.slane %v5361_v41, 1  ;;  %v1919_v16 = vrot.slane %v1917_v10, 2  ;;  %v1923_v24 = vshrl.u32 %v5387_v55, 16  ;;  %v1021_v25 = vsel %vm969_vm2, %v1016_v1, %v1020_v61  ;;  %v5432_v42 = vld [vmem:[#allocation2 + $0x40] sm:$0xff]  }
 0x127   : > { %4225 = vmatmul.mubr.bf16.gmra.mxu1 %v1005_v46  ;;  %4456 = vmatprep.subr.bf16.mxu0 %v4943_v38  ;;  %v5417_v26 = vsel %vm1895_vm4, %v1903_v14, %v1911_v17  ;;  %v5420_v20 = vsel %vm2186_vm3, %v2190_v8, %v2192_v58  ;;  %v1926_v29 = vshll.u32 %v5387_v55, 16  ;;  %v2194_v15 = vrot.slane %v5401_v7, 2 }
 0x128   : > { %4281 = vmatmul.mubr.bf16.gmra.mxu0 %v5276_v37  ;;  %4228 = vmatprep.mubr.msk.bf16.mxu1 %vm4944_vm0, %v4943_v38  ;;  %v5390_v37 = vsel %vm1391_vm1, %v1405_v31, %v1407_v51  ;;  %v5396_v62 = vsel %vm1391_vm1, %v1407_v51, %v1409_v53  ;;  %v5424_v31 = vld [vmem:[#allocation2 + $0x38] sm:$0xff]   ;;  %v1920_v32 = vor.u32 %v1919_v16, %v1916_v19  ;;  %v1925_v34 = vrot.slane %v1923_v24, 1 }
 0x129   : > { %4284 = vmatprep.mubr.msk.bf16.mxu0 %vm4944_vm0, %v4943_v38  ;;  %4313 = vmatpush3.bf16.msra.mxu1 %v4822_v44  ;;  %v1932_v39 = vshrl.u32 %v5401_v7, 16  ;;  %v1024_v40 = vor.u32 %v1022_v12, %v1020_v61  ;;  %v1928_v43 = vrot.slane %v1926_v29, 2  ;;  %v2196_v44 = vrot.slane %v5407_v13, 2 }
 0x12a   : > { %4314 = vmatprep.subr.bf16.mxu1 %v4943_v38  ;;  %v5437_v46 = vsel %vm1895_vm4, %v1911_v17, %v1920_v32  ;;  %v5440_v47 = vsel %vm2186_vm3, %v2192_v58, %v2194_v15  ;;  %v1941_v51 = vshrl.u32 %v5407_v13, 16  ;;  %v1944_v54 = vshll.u32 %v5407_v13, 16 }
 0x12b   : > { %v1934_v50 = vrot.slane %v1932_v39, 1  ;;  %v1929_v30 = vor.u32 %v1928_v43, %v1925_v34  ;;  %v5444_v53 = vsel %vm2186_vm3, %v2194_v15, %v2196_v44  ;;  %v2198_v60 = vrot.slane %v5424_v31, 2 }
 0x12c   : > { %v1943_v59 = vrot.slane %v1941_v51, 1  ;;  %v1950_v61 = vshrl.u32 %v5424_v31, 16  ;;  %v1953_v63 = vshll.u32 %v5424_v31, 16  ;;  %v1946_v2 = vrot.slane %v1944_v54, 2 }
 0x12d   : > { %4315 = vmatpush3.bf16.msra.mxu1 %v4827_v48  ;;  %v2200_v3 = vrot.slane %v5432_v42, 2  ;;  %v4870_v8 = vld [vmem:[#allocation2 + $0x50] ss:$0 sps:$4 sm:$0x33]   ;;  %v5457_v11 = vsel %vm2186_vm3, %v2196_v44, %v2198_v60  ;;  %v1959_v14 = vshrl.u32 %v5432_v42, 16  ;;  %v1962_v16 = vshll.u32 %v5432_v42, 16 }
 0x12e   : > { %4404 = vmatprep.subr.bf16.mxu1 %v4943_v38  ;;  %v1952_v10 = vrot.slane %v1950_v61, 1  ;;  %v1955_v12 = vrot.slane %v1953_v63, 2  ;;  %v1947_v58 = vor.u32 %v1946_v2, %v1943_v59  ;;  %v1968_v34 = vshrl.u32 %v5447_v56, 16 }
 0x12f   : > { %4229 = vmatmul.mubr.bf16.gmra.mxu1 %v1013_v0  ;;  %v5453_v0 = vsel %vm1895_vm4, %v1920_v32, %v1929_v30  ;;  %v5464_v19 = vsel %vm2186_vm3, %v2198_v60, %v2200_v3  ;;  %v1961_v29 = vrot.slane %v1959_v14, 1  ;;  %v2202_v32 = vrot.slane %v5447_v56, 2 }
 0x130   : > { %4285 = vmatmul.mubr.bf16.gmra.mxu0 %v5303_v57  ;;  %4232 = vmatprep.mubr.msk.bf16.mxu1 %vm4944_vm0, %v4943_v38  ;;  %v1935_v57 = vshll.u32 %v5401_v7, 16  ;;  %v1956_v24 = vor.u32 %v1955_v12, %v1952_v10  ;;  %v1964_v39 = vrot.slane %v1962_v16, 2  ;;  %v2204_v43 = vrot.slane %v4870_v8, 2  ;;  %v5508_v16 = vld [vmem:[#allocation2 + $0x14] sm:$0xf] }
 0x131   : > { %4288 = vmatprep.mubr.msk.bf16.mxu0 %vm4944_vm0, %v4943_v38  ;;  %v1970_v44 = vrot.slane %v1968_v34, 1  ;;  %v1980_v54 = vshll.u32 %v4870_v8, 16  ;;  %v1028_v60 = vrot.slane %v1026_v6, 1  ;;  %v1676_v34 = vrot.slane %v5326_v27, 1 }
 0x132   : > { %v1937_v48 = vrot.slane %v1935_v57, 2  ;;  %v5482_v57 = vsel %vm2186_vm3, %v2200_v3, %v2202_v32  ;;  %v1965_v51 = vor.u32 %v1964_v39, %v1961_v29  ;;  %v1034_v3 = vshll.u32 %v5361_v41, 16 }
 0x133   : > { %v1029_v2 = vsel %vm969_vm2, %v1024_v40, %v1028_v60  ;;  %v1030_v40 = vshrl.u32 %v5316_v9, 16  ;;  %v1038_v29 = vshrl.u32 %v5361_v41, 16 }
 0x134   : > { %v1938_v1 = vor.u32 %v1937_v48, %v1934_v50  ;;  %v1977_v50 = vshrl.u32 %v4870_v8, 16  ;;  %v5485_v48 = vsel %vm2186_vm3, %v2202_v32, %v2204_v43  ;;  %v5490_v61 = vsel %vm1895_vm4, %v1956_v24, %v1965_v51  ;;  %v5520_v43 = vld [vmem:[#allocation2 + $0x20] sm:$0xff]  }
 0x135   : > { %v1036_v8 = vrot.slane %v1034_v3, 1  ;;  %v1032_v14 = vor.u32 %v1030_v40, %v1028_v60  ;;  %v1042_v32 = vshll.u32 %v5351_v23, 16  ;;  %v4841_v23 = vld [vmem:[%s6340_s4 + $0x178] sm:$0xff]   ;;  %v5536_v60 = vld [vmem:[#allocation2 + $0x48] sm:$0xff]   ;;  %v2985_v3 = vrot.slane %v5520_v43, 3 }
 0x136   : > { %v5461_v17 = vsel %vm1895_vm4, %v1929_v30, %v1938_v1  ;;  %v5475_v15 = vsel %vm1895_vm4, %v1938_v1, %v1947_v58  ;;  %v1979_v59 = vrot.slane %v1977_v50, 1  ;;  %v1982_v1 = vrot.slane %v1980_v54, 2 }
 0x137   : > { %4233 = vmatmul.mubr.bf16.gmra.mxu1 %v1021_v25  ;;  %v1971_v25 = vshll.u32 %v5447_v56, 16  ;;  %v1675_v50 = vrot.slane %v5335_v21, 1 }
 0x138   : > { %4289 = vmatmul.mubr.bf16.gmra.mxu0 %v5310_v4  ;;  %4236 = vmatprep.mubr.msk.bf16.mxu1 %vm4944_vm0, %v4943_v38  ;;  %v5479_v4 = vsel %vm1895_vm4, %v1947_v58, %v1956_v24  ;;  %v1983_v12 = vor.u32 %v1982_v1, %v1979_v59  ;;  %v1037_v58 = vsel %vm969_vm2, %v1032_v14, %v1036_v8  ;;  %v2960_v24 = vld [vmem:[#allocation2 + $0x10] sm:$0x8]  ;;  %v5534_v59 = vld [vmem:[#allocation2 + $0x40] sm:$0xff]   ;;  %v5540_v1 = vld [vmem:[#allocation2 + $0x58] ss:$0 sps:$4 sm:$0x77]  }
 0x139   : > { %4292 = vmatprep.mubr.msk.bf16.mxu0 %vm4944_vm0, %v4943_v38  ;;  %v1973_v30 = vrot.slane %v1971_v25, 2  ;;  %v3839_v39 = vcombine.low %v2960_v24, %v5508_v16  ;;  %v5518_v25 = vld [vmem:[#allocation2 + $0x18] sm:$0xff]   ;;  %v1677_v54 = vsel %vm1391_vm1, %v1675_v50, %v1676_v34 }
 0x13b   : > { %v1974_v63 = vor.u32 %v1973_v30, %v1970_v44  ;;  %v1044_v44 = vrot.slane %v1042_v32, 1  ;;  %v5530_v30 = vld [vmem:[#allocation2 + $0x38] sm:$0xff]   ;;  %v2982_v21 = vrot.slane %v3839_v39, 3 }
 0x13c   : > { %v2991_v24 = vrot.slane %v5530_v30, 3 }
 0x13d   : > { %v5495_v10 = vsel %vm1895_vm4, %v1965_v51, %v1974_v63  ;;  %v5503_v6 = vsel %vm1895_vm4, %v1974_v63, %v1983_v12  ;;  %v5523_v51 = vld [vmem:[#allocation2 + $0x28] sm:$0xff]   ;;  %v5538_v63 = vld [vmem:[#allocation2 + $0x50] sm:$0xff]  }
 0x13e   : > { %v2987_v12 = vrot.slane %v5523_v51, 3  ;;  %v2997_v50 = vrot.slane %v5538_v63, 3 }
 0x13f   : > { %4237 = vmatmul.mubr.bf16.gmra.mxu1 %v1029_v2  ;;  %v2983_v2 = vrot.slane %v5518_v25, 3 }
 0x140   : > { %4293 = vmatmul.mubr.bf16.gmra.mxu0 %v5316_v9  ;;  %4240 = vmatprep.mubr.msk.bf16.mxu1 %vm4944_vm0, %v4943_v38  ;;  %v1040_v9 = vor.u32 %v1038_v29, %v1036_v8  ;;  %v4843_v8 = vld [vmem:[%s6340_s4 + $0x170] sm:$0xff]   ;;  %v5562_v29 = vsel %vm2981_vm5, %v2985_v3, %v2987_v12 }
 0x141   : > { %4296 = vmatprep.mubr.msk.bf16.mxu0 %vm4944_vm0, %v4943_v38  ;;  %v5554_v14 = vsel %vm2981_vm5, %v2982_v21, %v2983_v2 }
 0x142   : > { %v1045_v27 = vsel %vm969_vm2, %v1040_v9, %v1044_v44  ;;  %v2993_v9 = vrot.slane %v5534_v59, 3  ;;  %v2995_v44 = vrot.slane %v5536_v60, 3 }
 0x144   : > { %v5579_v21 = vsel %vm2981_vm5, %v2991_v24, %v2993_v9 }
 0x147   : > { %4241 = vmatmul.mubr.bf16.gmra.mxu1 %v1037_v58  ;;  %v5557_v58 = vsel %vm2981_vm5, %v2983_v2, %v2985_v3  ;;  %v5582_v2 = vsel %vm2981_vm5, %v2993_v9, %v2995_v44  ;;  %v5585_v3 = vsel %vm2981_vm5, %v2995_v44, %v2997_v50  ;;  %v4839_v44 = vld [vmem:[%s6340_s4 + $0x120] sm:$0xff]  }
 0x148   : > { %4297 = vmatmul.mubr.bf16.gmra.mxu0 %v5361_v41  ;;  %4244 = vmatprep.mubr.msk.bf16.mxu1 %vm4944_vm0, %v4943_v38  ;;  %v5525_v41 = vld [vmem:[#allocation2 + $0x30] sm:$0xff]  }
 0x149   : > { %4368 = vmatprep.mubr.msk.bf16.mxu0 %vm4944_vm0, %v4943_v38  ;;  %v2989_v40 = vrot.slane %v5525_v41, 3 }
 0x14b   : > { %v5565_v32 = vsel %vm2981_vm5, %v2987_v12, %v2989_v40  ;;  %v5569_v39 = vsel %vm2981_vm5, %v2989_v40, %v2991_v24  ;;  %v4837_v24 = vld [vmem:[%s6340_s4 + $0x128] sm:$0xff]  }
 0x14f   : > { %4245 = vmatmul.mubr.bf16.gmra.mxu1 %v1045_v27  ;;  %v4832_v27 = vld [vmem:[%s6340_s4 + $0x138] sm:$0xff]  }
 0x150   : > { %4369 = vmatmul.mubr.bf16.vlgmr.msra.gmra.mxu0 %v1677_v54  ;;  %4316 = vmatprep.mubr.msk.bf16.mxu1 %vm4944_vm0, %v4943_v38  ;;  %v1678_v54 = vrot.slane %v5379_v35, 1  ;;  %v4845_v35 = vld [vmem:[%s6340_s4 + $0x168] sm:$0xff]  }
 0x151   : > { %4372 = vmatprep.mubr.msk.bf16.mxu0 %vm4944_vm0, %v4943_v38  ;;  %4457 = vmatpush3.bf16.msra.mxu0 %v4841_v23  ;;  %v2999_v23 = vrot.slane %v5540_v1, 3 }
 0x152   : > { %4458 = vmatprep.subr.bf16.mxu0 %v4943_v38  ;;  %v1679_v40 = vsel %vm1391_vm1, %v1676_v34, %v1678_v54  ;;  %v1680_v34 = vrot.slane %v5387_v55, 1  ;;  %v4849_v55 = vld [vmem:[%s6340_s4 + $0x158] sm:$0xff]  }
 0x153   : > { %v5588_v12 = vsel %vm2981_vm5, %v2997_v50, %v2999_v23  ;;  %v1682_v50 = vrot.slane %v5401_v7, 1  ;;  %v4842_v23 = vld [vmem:[%s6340_s4 + $0x118] sm:$0xff]   ;;  %v4846_v7 = vld [vmem:[%s6340_s4 + $0x110] sm:$0xff]  }
 0x154   : > { %v1681_v9 = vsel %vm1391_vm1, %v1678_v54, %v1680_v34  ;;  %v4853_v54 = vld [vmem:[%s6340_s4 + $0x148] sm:$0xff]  }
 0x155   : > { %4459 = vmatpush3.bf16.msra.mxu0 %v4843_v8  ;;  %v4835_v8 = vld [vmem:[%s6340_s4 + $0x130] sm:$0xff]  }
 0x156   : > { %4460 = vmatprep.subr.bf16.mxu0 %v4943_v38 }
 0x157   : > { %4317 = vmatmul.mubr.bf16.vlgmr.msra.gmra.mxu1 %v5228_v52  ;;  %v4847_v52 = vld [vmem:[%s6340_s4 + $0x160] sm:$0xff]  }
 0x158   : > { %4373 = vmatmul.mubr.bf16.gmra.mxu0 %v1679_v40  ;;  %4405 = vmatpush3.bf16.msra.mxu1 %v4832_v27  ;;  %v1683_v27 = vsel %vm1391_vm1, %v1680_v34, %v1682_v50  ;;  %v1684_v40 = vrot.slane %v5407_v13, 1  ;;  %v4855_v13 = vld [vmem:[%s6340_s4 + $0x100] sm:$0xff]   ;;  %v1686_v34 = vrot.slane %v5424_v31, 1 }
 0x159   : > { %4320 = vmatprep.mubr.msk.bf16.mxu1 %vm4944_vm0, %v4943_v38  ;;  %4376 = vmatprep.mubr.msk.bf16.mxu0 %vm4944_vm0, %v4943_v38 }
 0x15a   : > { %4406 = vmatprep.subr.bf16.mxu1 %v4943_v38  ;;  %4461 = vmatpush3.bf16.msra.mxu0 %v4845_v35  ;;  %v4850_v35 = vld [vmem:[%s6340_s4 + $0x108] sm:$0xff]  }
 0x15b   : > { %4462 = vmatprep.subr.bf16.mxu0 %v4943_v38 }
 0x15c   : > { %4407 = vmatpush3.bf16.msra.mxu1 %v4835_v8  ;;  %v1685_v8 = vsel %vm1391_vm1, %v1682_v50, %v1684_v40  ;;  %v4865_v50 = vld [vmem:[%s6340_s4 + $0x190] sm:$0xff]  }
 0x15d   : > { %4408 = vmatprep.subr.bf16.mxu1 %v4943_v38 }
 0x15e   : > { %4463 = vmatpush3.bf16.msra.mxu0 %v4847_v52  ;;  %v1688_v52 = vrot.slane %v5432_v42, 1 }
 0x15f   : > { %4321 = vmatmul.mubr.bf16.gmra.mxu1 %v5268_v28  ;;  %4464 = vmatprep.subr.bf16.mxu0 %v4943_v38  ;;  %v4851_v28 = vld [vmem:[%s6340_s4 + $0x150] sm:$0xff]  }
 0x160   : > { %4377 = vmatmul.mubr.bf16.gmra.mxu0 %v1681_v9  ;;  %4324 = vmatprep.mubr.msk.bf16.mxu1 %vm4944_vm0, %v4943_v38  ;;  %v4852_v9 = vld [vmem:[#allocation2 + $0x50] ss:$0 sps:$4 sm:$0x11]  }
 0x161   : > { %4380 = vmatprep.mubr.msk.bf16.mxu0 %vm4944_vm0, %v4943_v38  ;;  %4409 = vmatpush3.bf16.msra.mxu1 %v4837_v24  ;;  %v1689_v24 = vsel %vm1391_vm1, %v1686_v34, %v1688_v52 }
 0x162   : > { %4410 = vmatprep.subr.bf16.mxu1 %v4943_v38  ;;  %4465 = vmatpush3.bf16.msra.mxu0 %v4849_v55  ;;  %v4867_v55 = vld [vmem:[%s6340_s4 + $0x1d8] sm:$0xff]  }
 0x163   : > { %4466 = vmatprep.subr.bf16.mxu0 %v4943_v38 }
 0x165   : > { %4411 = vmatpush3.bf16.msra.mxu1 %v4839_v44  ;;  %v4860_v44 = vld [vmem:[%s6340_s4 + $0x1a0] sm:$0xff]  }
 0x166   : > { %4412 = vmatprep.subr.bf16.mxu1 %v4943_v38  ;;  %4467 = vmatpush3.bf16.msra.mxu0 %v4851_v28  ;;  %v4871_v28 = vld [vmem:[%s6340_s4 + $0x1c8] sm:$0xff]  }
 0x167   : > { %4325 = vmatmul.mubr.bf16.gmra.mxu1 %v5292_v49  ;;  %4468 = vmatprep.subr.bf16.mxu0 %v4943_v38  ;;  %v4854_v49 = vld [vmem:[%s6340_s4 + $0x140] sm:$0xff]  }
 0x168   : > { %4381 = vmatmul.mubr.bf16.gmra.mxu0 %v1683_v27  ;;  %4328 = vmatprep.mubr.msk.bf16.mxu1 %vm4944_vm0, %v4943_v38 }
 0x169   : > { %4384 = vmatprep.mubr.msk.bf16.mxu0 %vm4944_vm0, %v4943_v38  ;;  %4413 = vmatpush3.bf16.msra.mxu1 %v4842_v23  ;;  %v4873_v23 = vld [vmem:[%s6340_s4 + $0x180] sm:$0xff]  }
 0x16a   : > { %4414 = vmatprep.subr.bf16.mxu1 %v4943_v38  ;;  %4469 = vmatpush3.bf16.msra.mxu0 %v4853_v54 }
 0x16b   : > { %4470 = vmatprep.subr.bf16.mxu0 %v4943_v38 }
 0x16d   : > { %4415 = vmatpush3.bf16.msra.mxu1 %v4846_v7 }
 0x16e   : > { %4416 = vmatprep.subr.bf16.mxu1 %v4943_v38  ;;  %4471 = vmatpush3.bf16.msra.mxu0 %v4854_v49 }
 0x16f   : > { %4329 = vmatmul.mubr.bf16.gmra.mxu1 %v5313_v5  ;;  %4560 = vmatprep.subr.bf16.mxu0 %v4943_v38  ;;  %v1687_v5 = vsel %vm1391_vm1, %v1684_v40, %v1686_v34  ;;  %v2703_v34 = vshll.u32 %v5518_v25, 16 }
 0x170   : > { %4385 = vmatmul.mubr.bf16.gmra.mxu0 %v1685_v8  ;;  %4332 = vmatprep.mubr.msk.bf16.mxu1 %vm4944_vm0, %v4943_v38 }
 0x171   : > { %4388 = vmatprep.mubr.msk.bf16.mxu0 %vm4944_vm0, %v4943_v38  ;;  %4417 = vmatpush3.bf16.msra.mxu1 %v4850_v35 }
 0x172   : > { %4418 = vmatprep.subr.bf16.mxu1 %v4943_v38 }
 0x175   : > { %4419 = vmatpush3.bf16.msra.mxu1 %v4855_v13 }
 0x176   : > { %4508 = vmatprep.subr.bf16.mxu1 %v4943_v38 }
 0x177   : > { %4333 = vmatmul.mubr.bf16.gmra.mxu1 %v5338_v22  ;;  %v1690_v22 = vrot.slane %v5447_v56, 1  ;;  %v4857_v56 = vld [vmem:[%s6340_s4 + $0x1b8] sm:$0xff]  }
 0x178   : > { %4389 = vmatmul.mubr.bf16.gmra.mxu0 %v1687_v5  ;;  %4336 = vmatprep.mubr.msk.bf16.mxu1 %vm4944_vm0, %v4943_v38 }
 0x179   : > { %4392 = vmatprep.mubr.msk.bf16.mxu0 %vm4944_vm0, %v4943_v38  ;;  %v1691_v31 = vsel %vm1391_vm1, %v1688_v52, %v1690_v22 }
 0x17f   : > { %4337 = vmatmul.mubr.bf16.gmra.mxu1 %v5354_v33  ;;  %v1692_v33 = vrot.slane %v4852_v9, 1 }
 0x180   : > { %4393 = vmatmul.mubr.bf16.gmra.mxu0 %v1689_v24  ;;  %4340 = vmatprep.mubr.msk.bf16.mxu1 %vm4944_vm0, %v4943_v38 }
 0x181   : > { %4396 = vmatprep.mubr.msk.bf16.mxu0 %vm4944_vm0, %v4943_v38  ;;  %v1693_v42 = vsel %vm1391_vm1, %v1690_v22, %v1692_v33 }
 0x187   : > { %4341 = vmatmul.mubr.bf16.gmra.mxu1 %v5358_v36  ;;  %v4861_v36 = vld [vmem:[%s6340_s4 + $0x1f8] sm:$0xff]  }
 0x188   : > { %4397 = vmatmul.mubr.bf16.gmra.mxu0 %v1691_v31  ;;  %4344 = vmatprep.mubr.msk.bf16.mxu1 %vm4944_vm0, %v4943_v38 }
 0x189   : > { %4400 = vmatprep.mubr.msk.bf16.mxu0 %vm4944_vm0, %v4943_v38 }
 0x18f   : > { %4345 = vmatmul.mubr.bf16.gmra.mxu1 %v5390_v37  ;;  %v4863_v37 = vld [vmem:[%s6340_s4 + $0x1f0] sm:$0xff]  }
 0x190   : > { %4401 = vmatmul.mubr.bf16.gmra.mxu0 %v1693_v42  ;;  %4348 = vmatprep.mubr.msk.bf16.mxu1 %vm4944_vm0, %v4943_v38 }
 0x191   : > { %4472 = vmatprep.mubr.msk.bf16.mxu0 %vm4944_vm0, %v4943_v38 }
 0x197   : > { %4349 = vmatmul.mubr.bf16.gmra.mxu1 %v5396_v62  ;;  %v4858_v62 = vld [vmem:[%s6340_s4 + $0x1b0] sm:$0xff]  }
 0x198   : > { %4473 = vmatmul.mubr.bf16.vlgmr.msra.gmra.mxu0 %v5369_v45  ;;  %4420 = vmatprep.mubr.msk.bf16.mxu1 %vm4944_vm0, %v4943_v38  ;;  %v4864_v45 = vld [vmem:[%s6340_s4 + $0x1e8] sm:$0xff]  }
 0x199   : > { %4476 = vmatprep.mubr.msk.bf16.mxu0 %vm4944_vm0, %v4943_v38  ;;  %4561 = vmatpush3.bf16.msra.mxu0 %v4861_v36  ;;  %v2705_v36 = vrot.slane %v2703_v34, 3 }
 0x19a   : > { %4562 = vmatprep.subr.bf16.mxu0 %v4943_v38 }
 0x19d   : > { %4563 = vmatpush3.bf16.msra.mxu0 %v4863_v37 }
 0x19e   : > { %4564 = vmatprep.subr.bf16.mxu0 %v4943_v38 }
 0x19f   : > { %4421 = vmatmul.mubr.bf16.vlgmr.msra.gmra.mxu1 %v5417_v26  ;;  %v4866_v26 = vld [vmem:[%s6340_s4 + $0x1e0] sm:$0xff]  }
 0x1a0   : > { %4477 = vmatmul.mubr.bf16.gmra.mxu0 %v5411_v18  ;;  %4509 = vmatpush3.bf16.msra.mxu1 %v4857_v56  ;;  %v4859_v18 = vld [vmem:[%s6340_s4 + $0x1a8] sm:$0xff]  }
 0x1a1   : > { %4424 = vmatprep.mubr.msk.bf16.mxu1 %vm4944_vm0, %v4943_v38  ;;  %4480 = vmatprep.mubr.msk.bf16.mxu0 %vm4944_vm0, %v4943_v38 }
 0x1a2   : > { %4510 = vmatprep.subr.bf16.mxu1 %v4943_v38  ;;  %4565 = vmatpush3.bf16.msra.mxu0 %v4864_v45 }
 0x1a3   : > { %4566 = vmatprep.subr.bf16.mxu0 %v4943_v38 }
 0x1a4   : > { %4511 = vmatpush3.bf16.msra.mxu1 %v4858_v62  ;;  %v2709_v62 = vshrl.u32 %v5520_v43, 16 }
 0x1a5   : > { %4512 = vmatprep.subr.bf16.mxu1 %v4943_v38 }
 0x1a6   : > { %4567 = vmatpush3.bf16.msra.mxu0 %v4866_v26 }
 0x1a7   : > { %4425 = vmatmul.mubr.bf16.gmra.mxu1 %v5437_v46  ;;  %4568 = vmatprep.subr.bf16.mxu0 %v4943_v38  ;;  %v4862_v46 = vld [vmem:[%s6340_s4 + $0x198] sm:$0xff]  }
 0x1a8   : > { %4481 = vmatmul.mubr.bf16.gmra.mxu0 %v5420_v20  ;;  %4428 = vmatprep.mubr.msk.bf16.mxu1 %vm4944_vm0, %v4943_v38  ;;  %v4869_v20 = vld [vmem:[%s6340_s4 + $0x1d0] sm:$0xff]  }
 0x1a9   : > { %4484 = vmatprep.mubr.msk.bf16.mxu0 %vm4944_vm0, %v4943_v38  ;;  %4513 = vmatpush3.bf16.msra.mxu1 %v4859_v18 }
 0x1aa   : > { %4514 = vmatprep.subr.bf16.mxu1 %v4943_v38  ;;  %4569 = vmatpush3.bf16.msra.mxu0 %v4867_v55 }
 0x1ab   : > { %4570 = vmatprep.subr.bf16.mxu0 %v4943_v38 }
 0x1ad   : > { %4515 = vmatpush3.bf16.msra.mxu1 %v4860_v44 }
 0x1ae   : > { %4516 = vmatprep.subr.bf16.mxu1 %v4943_v38  ;;  %4571 = vmatpush3.bf16.msra.mxu0 %v4869_v20 }
 0x1af   : > { %4429 = vmatmul.mubr.bf16.gmra.mxu1 %v5453_v0  ;;  %4572 = vmatprep.subr.bf16.mxu0 %v4943_v38  ;;  %v4868_v0 = vld [vmem:[%s6340_s4 + $0x188] sm:$0xff]  }
 0x1b0   : > { %4485 = vmatmul.mubr.bf16.gmra.mxu0 %v5440_v47  ;;  %4432 = vmatprep.mubr.msk.bf16.mxu1 %vm4944_vm0, %v4943_v38  ;;  %v4872_v47 = vld [vmem:[%s6340_s4 + $0x1c0] sm:$0xff]  }
 0x1b1   : > { %4488 = vmatprep.mubr.msk.bf16.mxu0 %vm4944_vm0, %v4943_v38  ;;  %4517 = vmatpush3.bf16.msra.mxu1 %v4862_v46 }
 0x1b2   : > { %4518 = vmatprep.subr.bf16.mxu1 %v4943_v38  ;;  %4573 = vmatpush3.bf16.msra.mxu0 %v4871_v28  ;;  %v2711_v28 = vrot.slane %v2709_v62, 2 }
 0x1b3   : > { %4574 = vmatprep.subr.bf16.mxu0 %v4943_v38 }
 0x1b5   : > { %4519 = vmatpush3.bf16.msra.mxu1 %v4865_v50 }
 0x1b6   : > { %4520 = vmatprep.subr.bf16.mxu1 %v4943_v38  ;;  %4575 = vmatpush3.bf16.msra.mxu0 %v4872_v47 }
 0x1b7   : > { %4433 = vmatmul.mubr.bf16.gmra.mxu1 %v5461_v17  ;;  %4664 = vmatprep.subr.bf16.mxu0 %v4943_v38 }
 0x1b8   : > { %4489 = vmatmul.mubr.bf16.gmra.mxu0 %v5444_v53  ;;  %4436 = vmatprep.mubr.msk.bf16.mxu1 %vm4944_vm0, %v4943_v38 }
 0x1b9   : > { %4492 = vmatprep.mubr.msk.bf16.mxu0 %vm4944_vm0, %v4943_v38  ;;  %4521 = vmatpush3.bf16.msra.mxu1 %v4868_v0 }
 0x1ba   : > { %4522 = vmatprep.subr.bf16.mxu1 %v4943_v38 }
 0x1bd   : > { %4523 = vmatpush3.bf16.msra.mxu1 %v4873_v23 }
 0x1be   : > { %4612 = vmatprep.subr.bf16.mxu1 %v4943_v38 }
 0x1bf   : > { %4437 = vmatmul.mubr.bf16.gmra.mxu1 %v5475_v15 }
 0x1c0   : > { %4493 = vmatmul.mubr.bf16.gmra.mxu0 %v5457_v11  ;;  %4440 = vmatprep.mubr.msk.bf16.mxu1 %vm4944_vm0, %v4943_v38  ;;  %v2386_v11 = vld [vmem:[#allocation2 + $0x10] sm:$0xc] }
 0x1c1   : > { %4496 = vmatprep.mubr.msk.bf16.mxu0 %vm4944_vm0, %v4943_v38  ;;  %v5805_v54 = vcombine.low %v2386_v11, %v5508_v16 }
 0x1c3   : > { %v2692_v35 = vshrl.u32 %v5805_v54, 16  ;;  %v2695_v16 = vshll.u32 %v5805_v54, 16 }
 0x1c5   : > { %v2694_v24 = vrot.slane %v2692_v35, 2  ;;  %v2697_v22 = vrot.slane %v2695_v16, 3  ;;  %v2721_v35 = vshll.u32 %v5523_v51, 16 }
 0x1c7   : > { %4441 = vmatmul.mubr.bf16.gmra.mxu1 %v5479_v4  ;;  %v2698_v45 = vor.u32 %v2697_v22, %v2694_v24  ;;  %v4879_v24 = vld [vmem:[%s6340_s4 + $0x230] sm:$0xff]  }
 0x1c8   : > { %v1299_v53 = vpop.f32.mrf.mxu0  ;;  %4497 = vmatmul.mubr.bf16.gmra.mxu0 %v5464_v19  ;;  %4444 = vmatprep.mubr.msk.bf16.mxu1 %vm4944_vm0, %v4943_v38 }
 0x1c9   : > { %4500 = vmatprep.mubr.msk.bf16.mxu0 %vm4944_vm0, %v4943_v38 }
 0x1ca   : > { %v4266_v17 = vpop.f32.mrf.mxu0 }
 0x1cc   : > { %v1302_v15 = vpop.f32.mrf.mxu0 }
 0x1ce   : > { %v4267_v27 = vpop.f32.mrf.mxu0 }
 0x1cf   : > { %v1137_v7 = vpop.f32.mrf.mxu1  ;;  %4445 = vmatmul.mubr.bf16.gmra.mxu1 %v5490_v61 }
 0x1d0   : > { %v1307_v4 = vpop.f32.mrf.mxu0  ;;  %4501 = vmatmul.mubr.bf16.gmra.mxu0 %v5482_v57  ;;  %v5809_v19 = vadd.f32 %v1299_v53, %v1137_v7  ;;  %4448 = vmatprep.mubr.msk.bf16.mxu1 %vm4944_vm0, %v4943_v38  ;;  %v2700_v57 = vshrl.u32 %v5518_v25, 16 }
 0x1d1   : > { %4504 = vmatprep.mubr.msk.bf16.mxu0 %vm4944_vm0, %v4943_v38  ;;  %v4214_v40 = vpop.f32.mrf.mxu1 }
 0x1d2   : > { %v4270_v49 = vpop.f32.mrf.mxu0  ;;  %v2702_v42 = vrot.slane %v2700_v57, 2  ;;  %v4876_v40 = vld [vmem:[%s6340_s4 + $0x238] sm:$0xff]  }
 0x1d3   : > { %v1140_v8 = vpop.f32.mrf.mxu1  ;;  %v2718_v49 = vshrl.u32 %v5523_v51, 16 }
 0x1d4   : > { %v1310_v13 = vpop.f32.mrf.mxu0  ;;  %v5817_v61 = vadd.f32 %v1302_v15, %v1140_v8  ;;  %v2706_v55 = vor.u32 %v2705_v36, %v2702_v42  ;;  %v2470_v15 = vrot.slane %v5805_v54, 2  ;;  %v2727_v42 = vshrl.u32 %v5525_v41, 16 }
 0x1d5   : > { %v4215_v5 = vpop.f32.mrf.mxu1  ;;  %v2730_v36 = vshll.u32 %v5525_v41, 16 }
 0x1d6   : > { %v4271_v52 = vpop.f32.mrf.mxu0  ;;  %v2707_v46 = vsel %vm2690_vm6, %v2698_v45, %v2706_v55 }
 0x1d7   : > { %v1145_v31 = vpop.f32.mrf.mxu1  ;;  %4449 = vmatmul.mubr.bf16.gmra.mxu1 %v5495_v10  ;;  %v2712_v10 = vshll.u32 %v5520_v43, 16  ;;  %v2723_v52 = vrot.slane %v2721_v35, 3 }
 0x1d8   : > { %v1315_v9 = vpop.f32.mrf.mxu0  ;;  %4505 = vmatmul.mubr.bf16.gmra.mxu0 %v5485_v48  ;;  %v5823_v33 = vadd.f32 %v1307_v4, %v1145_v31  ;;  %4452 = vmatprep.mubr.msk.bf16.mxu1 %vm4944_vm0, %v4943_v38 }
 0x1d9   : > { %4576 = vmatprep.mubr.msk.bf16.mxu0 %vm4944_vm0, %v4943_v38  ;;  %v4218_v37 = vpop.f32.mrf.mxu1  ;;  %v2714_v50 = vrot.slane %v2712_v10, 3 }
 0x1da   : > { %v4274_v56 = vpop.f32.mrf.mxu0 }
 0x1db   : > { %v1148_v26 = vpop.f32.mrf.mxu1  ;;  %v2715_v11 = vor.u32 %v2714_v50, %v2711_v28 }
 0x1dc   : > { %v1318_v18 = vpop.f32.mrf.mxu0  ;;  %v5831_v48 = vadd.f32 %v1310_v13, %v1148_v26 }
 0x1dd   : > { %v4219_v44 = vpop.f32.mrf.mxu1  ;;  %v2716_v54 = vsel %vm2690_vm6, %v2706_v55, %v2715_v11 }
 0x1de   : > { %v4275_v20 = vpop.f32.mrf.mxu0  ;;  %v2729_v44 = vrot.slane %v2727_v42, 2  ;;  %v2748_v42 = vshll.u32 %v5534_v59, 16 }
 0x1df   : > { %v1153_v47 = vpop.f32.mrf.mxu1  ;;  %4453 = vmatmul.mubr.bf16.gmra.mxu1 %v5503_v6  ;;  %v2471_v6 = vrot.slane %v5518_v25, 2  ;;  %v2720_v25 = vrot.slane %v2718_v49, 2  ;;  %v2732_v20 = vrot.slane %v2730_v36, 3 }
 0x1e0   : > { %v1323_v0 = vpop.f32.mrf.mxu0  ;;  %4577 = vmatmul.mubr.bf16.vlgmr.msra.gmra.mxu0 %v2707_v46  ;;  %v5835_v23 = vadd.f32 %v1315_v9, %v1153_v47  ;;  %4524 = vmatprep.mubr.msk.bf16.mxu1 %vm4944_vm0, %v4943_v38  ;;  %v2473_v9 = vrot.slane %v5520_v43, 2 }
 0x1e1   : > { %4580 = vmatprep.mubr.msk.bf16.mxu0 %vm4944_vm0, %v4943_v38  ;;  %v4222_v53 = vpop.f32.mrf.mxu1  ;;  %v2472_v13 = vsel %vm2186_vm3, %v2470_v15, %v2471_v6  ;;  %v2724_v62 = vor.u32 %v2723_v52, %v2720_v25 }
 0x1e2   : > { %v4278_v17 = vpop.f32.mrf.mxu0  ;;  %v2474_v43 = vsel %vm2186_vm3, %v2471_v6, %v2473_v9  ;;  %v4883_v53 = vld [vmem:[%s6340_s4 + $0x220] sm:$0xff]   ;;  %v2736_v6 = vshrl.u32 %v5530_v30, 16 }
 0x1e3   : > { %v1156_v27 = vpop.f32.mrf.mxu1  ;;  %v2725_v55 = vsel %vm2690_vm6, %v2715_v11, %v2724_v62  ;;  %v2733_v17 = vor.u32 %v2732_v20, %v2729_v44  ;;  %v2750_v44 = vrot.slane %v2748_v42, 3 }
 0x1e4   : > { %v1326_v7 = vpop.f32.mrf.mxu0  ;;  %v5842_v4 = vadd.f32 %v1318_v18, %v1156_v27  ;;  %v4881_v18 = vld [vmem:[%s6340_s4 + $0x228] sm:$0xff]  }
 0x1e5   : > { %v4223_v16 = vpop.f32.mrf.mxu1 }
 0x1e6   : > { %v4279_v8 = vpop.f32.mrf.mxu0  ;;  %v4885_v16 = vld [vmem:[%s6340_s4 + $0x218] sm:$0xff]  }
 0x1e7   : > { %v1161_v57 = vpop.f32.mrf.mxu1  ;;  %4525 = vmatmul.mubr.bf16.vlgmr.msra.gmra.mxu1 %v2472_v13  ;;  %v2734_v13 = vsel %vm2690_vm6, %v2724_v62, %v2733_v17 }
 0x1e8   : > { %v1331_v34 = vpop.f32.mrf.mxu0  ;;  %4581 = vmatmul.mubr.bf16.gmra.mxu0 %v2716_v54  ;;  %v5852_v5 = vadd.f32 %v1323_v0, %v1161_v57  ;;  %4613 = vmatpush3.bf16.msra.mxu1 %v4876_v40  ;;  %v2739_v40 = vshll.u32 %v5530_v30, 16 }
 0x1e9   : > { %4528 = vmatprep.mubr.msk.bf16.mxu1 %vm4944_vm0, %v4943_v38  ;;  %v4226_v22 = vpop.f32.mrf.mxu1  ;;  %4584 = vmatprep.mubr.msk.bf16.mxu0 %vm4944_vm0, %v4943_v38 }
 0x1ea   : > { %v4282_v31 = vpop.f32.mrf.mxu0  ;;  %4614 = vmatprep.subr.bf16.mxu1 %v4943_v38  ;;  %v2741_v25 = vrot.slane %v2739_v40, 3  ;;  %v4887_v22 = vld [vmem:[%s6340_s4 + $0x210] sm:$0xff]   ;;  %v2754_v40 = vshrl.u32 %v5536_v60, 16 }
 0x1eb   : > { %v1164_v37 = vpop.f32.mrf.mxu1  ;;  %v2477_v31 = vrot.slane %v5525_v41, 2 }
 0x1ec   : > { %v1334_v56 = vpop.f32.mrf.mxu0  ;;  %v5865_v45 = vadd.f32 %v1326_v7, %v1164_v37  ;;  %4615 = vmatpush3.bf16.msra.mxu1 %v4879_v24  ;;  %v2475_v7 = vrot.slane %v5523_v51, 2 }
 0x1ed   : > { %v4227_v10 = vpop.f32.mrf.mxu1  ;;  %4616 = vmatprep.subr.bf16.mxu1 %v4943_v38 }
 0x1ee   : > { %v4283_v26 = vpop.f32.mrf.mxu0  ;;  %v2476_v8 = vsel %vm2186_vm3, %v2473_v9, %v2475_v7  ;;  %v2745_v9 = vshrl.u32 %v5534_v59, 16  ;;  %v2478_v41 = vsel %vm2186_vm3, %v2475_v7, %v2477_v31 }
 0x1ef   : > { %v1169_v46 = vpop.f32.mrf.mxu1  ;;  %4529 = vmatmul.mubr.bf16.gmra.mxu1 %v2474_v43 }
 0x1f0   : > { %v1339_v28 = vpop.f32.mrf.mxu0  ;;  %4585 = vmatmul.mubr.bf16.gmra.mxu0 %v2725_v55  ;;  %v5873_v50 = vadd.f32 %v1331_v34, %v1169_v46  ;;  %4532 = vmatprep.mubr.msk.bf16.mxu1 %vm4944_vm0, %v4943_v38  ;;  %v2738_v34 = vrot.slane %v2736_v6, 2  ;;  %v2747_v55 = vrot.slane %v2745_v9, 2  ;;  %v2479_v6 = vrot.slane %v5530_v30, 2 }
 0x1f1   : > { %4588 = vmatprep.mubr.msk.bf16.mxu0 %vm4944_vm0, %v4943_v38  ;;  %v4230_v47 = vpop.f32.mrf.mxu1  ;;  %4617 = vmatpush3.bf16.msra.mxu1 %v4881_v18  ;;  %v4889_v18 = vld [vmem:[%s6340_s4 + $0x208] sm:$0xff]   ;;  %v2756_v30 = vrot.slane %v2754_v40, 2  ;;  %v2766_v9 = vshll.u32 %v5538_v63, 16  ;;  %v2775_v40 = vshll.u32 %v5540_v1, 16 }
 0x1f2   : > { %v4286_v0 = vpop.f32.mrf.mxu0  ;;  %4618 = vmatprep.subr.bf16.mxu1 %v4943_v38  ;;  %v2742_v62 = vor.u32 %v2741_v25, %v2738_v34 }
 0x1f3   : > { %v1172_v15 = vpop.f32.mrf.mxu1 }
 0x1f4   : > { %v1342_v11 = vpop.f32.mrf.mxu0  ;;  %v5883_v27 = vadd.f32 %v1334_v56, %v1172_v15  ;;  %v2743_v43 = vsel %vm2690_vm6, %v2733_v17, %v2742_v62  ;;  %v2751_v17 = vor.u32 %v2750_v44, %v2747_v55  ;;  %v2768_v55 = vrot.slane %v2766_v9, 3 }
 0x1f5   : > { %v4231_v49 = vpop.f32.mrf.mxu1  ;;  %4619 = vmatpush3.bf16.msra.mxu1 %v4883_v53  ;;  %v4891_v53 = vld [vmem:[%s6340_s4 + $0x200] sm:$0xff]  }
 0x1f6   : > { %v4287_v35 = vpop.f32.mrf.mxu0  ;;  %4620 = vmatprep.subr.bf16.mxu1 %v4943_v38  ;;  %v2757_v49 = vshll.u32 %v5536_v60, 16 }
 0x1f7   : > { %v1177_v54 = vpop.f32.mrf.mxu1  ;;  %4533 = vmatmul.mubr.bf16.gmra.mxu1 %v2476_v8  ;;  %v2480_v8 = vsel %vm2186_vm3, %v2477_v31, %v2479_v6  ;;  %v2763_v31 = vshrl.u32 %v5538_v63, 16 }
 0x1f8   : > { %v1347_v51 = vpop.f32.mrf.mxu0  ;;  %4589 = vmatmul.mubr.bf16.gmra.mxu0 %v2734_v13  ;;  %v5894_v57 = vadd.f32 %v1339_v28, %v1177_v54  ;;  %4536 = vmatprep.mubr.msk.bf16.mxu1 %vm4944_vm0, %v4943_v38  ;;  %v2752_v13 = vsel %vm2690_vm6, %v2742_v62, %v2751_v17  ;;  %v2759_v25 = vrot.slane %v2757_v49, 3 }
 0x1f9   : > { %4592 = vmatprep.mubr.msk.bf16.mxu0 %vm4944_vm0, %v4943_v38  ;;  %v4234_v52 = vpop.f32.mrf.mxu1  ;;  %4621 = vmatpush3.bf16.msra.mxu1 %v4885_v16 }
 0x1fa   : > { %v4290_v24 = vpop.f32.mrf.mxu0  ;;  %4622 = vmatprep.subr.bf16.mxu1 %v4943_v38  ;;  %v2760_v62 = vor.u32 %v2759_v25, %v2756_v30 }
 0x1fb   : > { %v1180_v36 = vpop.f32.mrf.mxu1 }
 0x1fc   : > { %v1350_v37 = vpop.f32.mrf.mxu0  ;;  %v5907_v56 = vadd.f32 %v1342_v11, %v1180_v36 }
 0x1fd   : > { %v4235_v10 = vpop.f32.mrf.mxu1  ;;  %4623 = vmatpush3.bf16.msra.mxu1 %v4887_v22  ;;  %v2481_v22 = vrot.slane %v5534_v59, 2 }
 0x1fe   : > { %v4291_v26 = vpop.f32.mrf.mxu0  ;;  %4624 = vmatprep.subr.bf16.mxu1 %v4943_v38 }
 0x1ff   : > { %v1185_v20 = vpop.f32.mrf.mxu1  ;;  %4537 = vmatmul.mubr.bf16.gmra.mxu1 %v2478_v41  ;;  %v2761_v41 = vsel %vm2690_vm6, %v2751_v17, %v2760_v62 }
 0x200   : > { %v1355_v46 = vpop.f32.mrf.mxu0  ;;  %4593 = vmatmul.mubr.bf16.gmra.mxu0 %v2743_v43  ;;  %v5915_v28 = vadd.f32 %v1347_v51, %v1185_v20  ;;  %4540 = vmatprep.mubr.msk.bf16.mxu1 %vm4944_vm0, %v4943_v38  ;;  %v2765_v43 = vrot.slane %v2763_v31, 2 }
 0x201   : > { %4596 = vmatprep.mubr.msk.bf16.mxu0 %vm4944_vm0, %v4943_v38  ;;  %v4238_v47 = vpop.f32.mrf.mxu1  ;;  %4625 = vmatpush3.bf16.msra.mxu1 %v4889_v18  ;;  %v2482_v18 = vsel %vm2186_vm3, %v2479_v6, %v2481_v22  ;;  %v2772_v6 = vshrl.u32 %v5540_v1, 16  ;;  %v2777_v1 = vrot.slane %v2775_v40, 3 }
 0x202   : > { %v4294_v0 = vpop.f32.mrf.mxu0  ;;  %4626 = vmatprep.subr.bf16.mxu1 %v4943_v38 }
 0x203   : > { %v1188_v15 = vpop.f32.mrf.mxu1  ;;  %v2769_v0 = vor.u32 %v2768_v55, %v2765_v43  ;;  %v4892_v43 = vld [vmem:[#allocation2 + $0x58] ss:$0 sps:$4 sm:$0x33]  }
 0x204   : > { %v1358_v11 = vpop.f32.mrf.mxu0  ;;  %v5925_v7 = vadd.f32 %v1350_v37, %v1188_v15 }
 0x205   : > { %v4239_v35 = vpop.f32.mrf.mxu1  ;;  %4627 = vmatpush3.bf16.msra.mxu1 %v4891_v53 }
 0x206   : > { %v4295_v16 = vpop.f32.mrf.mxu0  ;;  %4716 = vmatprep.subr.bf16.mxu1 %v4943_v38 }
 0x207   : > { %v1193_v54 = vpop.f32.mrf.mxu1  ;;  %4541 = vmatmul.mubr.bf16.gmra.mxu1 %v2480_v8  ;;  %v2770_v8 = vsel %vm2690_vm6, %v2760_v62, %v2769_v0 }
 0x208   : > { %v1363_v51 = vpop.f32.mrf.mxu0  ;;  %4597 = vmatmul.mubr.bf16.gmra.mxu0 %v2752_v13  ;;  %v5933_v34 = vadd.f32 %v1355_v46, %v1193_v54  ;;  %4544 = vmatprep.mubr.msk.bf16.mxu1 %vm4944_vm0, %v4943_v38 }
 0x209   : > { %4600 = vmatprep.mubr.msk.bf16.mxu0 %vm4944_vm0, %v4943_v38  ;;  %v4242_v52 = vpop.f32.mrf.mxu1 }
 0x20a   : > { %v4298_v24 = vpop.f32.mrf.mxu0  ;;  %v2485_v52 = vrot.slane %v5538_v63, 2 }
 0x20b   : > { %v1196_v42 = vpop.f32.mrf.mxu1 }
 0x20c   : > { %v1366_v36 = vpop.f32.mrf.mxu0  ;;  %v5942_v37 = vadd.f32 %v1358_v11, %v1196_v42  ;;  %v2483_v11 = vrot.slane %v5536_v60, 2  ;;  %v2774_v60 = vrot.slane %v2772_v6, 2 }
 0x20d   : > { %v4243_v10 = vpop.f32.mrf.mxu1 }
 0x20e   : > { %v4299_v26 = vpop.f32.mrf.mxu0  ;;  %v2484_v16 = vsel %vm2186_vm3, %v2481_v22, %v2483_v11  ;;  %v2778_v42 = vor.u32 %v2777_v1, %v2774_v60  ;;  %v2486_v62 = vsel %vm2186_vm3, %v2483_v11, %v2485_v52 }
 0x20f   : > { %v1201_v44 = vpop.f32.mrf.mxu1  ;;  %4545 = vmatmul.mubr.bf16.gmra.mxu1 %v2482_v18 }
 0x210   : > { %v1785_v59 = vpop.f32.mrf.mxu0  ;;  %4601 = vmatmul.mubr.bf16.gmra.mxu0 %v2761_v41  ;;  %v5946_v20 = vadd.f32 %v1363_v51, %v1201_v44  ;;  %4548 = vmatprep.mubr.msk.bf16.mxu1 %vm4944_vm0, %v4943_v38  ;;  %v2779_v10 = vsel %vm2690_vm6, %v2769_v0, %v2778_v42  ;;  %v2487_v0 = vrot.slane %v4892_v43, 2 }
 0x211   : > { %4604 = vmatprep.mubr.msk.bf16.mxu0 %vm4944_vm0, %v4943_v38  ;;  %v4246_v46 = vpop.f32.mrf.mxu1 }
 0x212   : > { %v4370_v47 = vpop.f32.mrf.mxu0 }
 0x213   : > { %v1204_v53 = vpop.f32.mrf.mxu1 }
 0x214   : > { %v1788_v15 = vpop.f32.mrf.mxu0  ;;  %v5952_v17 = vadd.f32 %v1366_v36, %v1204_v53 }
 0x215   : > { %v4247_v49 = vpop.f32.mrf.mxu1 }
 0x216   : > { %v4371_v35 = vpop.f32.mrf.mxu0 }
 0x217   : > { %v1502_v13 = vpop.f32.mrf.mxu1  ;;  %4549 = vmatmul.mubr.bf16.gmra.mxu1 %v2484_v16 }
 0x218   : > { %v1793_v54 = vpop.f32.mrf.mxu0  ;;  %4605 = vmatmul.mubr.bf16.gmra.mxu0 %v2770_v8  ;;  %v1573_v51 = vadd.f32 %v1502_v13, %v5809_v19  ;;  %4552 = vmatprep.mubr.msk.bf16.mxu1 %vm4944_vm0, %v4943_v38 }
 0x219   : > { %4608 = vmatprep.mubr.msk.bf16.mxu0 %vm4944_vm0, %v4943_v38  ;;  %v4318_v30 = vpop.f32.mrf.mxu1 }
 0x21a   : > { %v4374_v25 = vpop.f32.mrf.mxu0  ;;  %v5965_v24 = vadd.f32 %v1785_v59, %v1573_v51 }
 0x21b   : > { %v1505_v22 = vpop.f32.mrf.mxu1 }
 0x21c   : > { %v1796_v31 = vpop.f32.mrf.mxu0  ;;  %v1574_v9 = vadd.f32 %v1505_v22, %v5817_v61 }
 0x21d   : > { %v4319_v19 = vpop.f32.mrf.mxu1 }
 0x21e   : > { %v4375_v36 = vpop.f32.mrf.mxu0  ;;  %v5970_v26 = vadd.f32 %v1788_v15, %v1574_v9 }
 0x21f   : > { %v1510_v18 = vpop.f32.mrf.mxu1  ;;  %4553 = vmatmul.mubr.bf16.gmra.mxu1 %v2486_v62 }
 0x220   : > { %v1801_v41 = vpop.f32.mrf.mxu0  ;;  %4609 = vmatmul.mubr.bf16.gmra.mxu0 %v2779_v10  ;;  %v1575_v63 = vadd.f32 %v1510_v18, %v5823_v33  ;;  %4556 = vmatprep.mubr.msk.bf16.mxu1 %vm4944_vm0, %v4943_v38  ;;  %v2488_v33 = vsel %vm2186_vm3, %v2485_v52, %v2487_v0 }
 0x221   : > { %4680 = vmatprep.mubr.msk.bf16.mxu0 %vm4944_vm0, %v4943_v38  ;;  %v4322_v61 = vpop.f32.mrf.mxu1 }
 0x222   : > { %v4378_v55 = vpop.f32.mrf.mxu0  ;;  %v5977_v44 = vadd.f32 %v1793_v54, %v1575_v63 }
 0x223   : > { %v1513_v59 = vpop.f32.mrf.mxu1 }
 0x224   : > { %v1804_v46 = vpop.f32.mrf.mxu0  ;;  %v1576_v47 = vadd.f32 %v1513_v59, %v5831_v48 }
 0x225   : > { %v4323_v53 = vpop.f32.mrf.mxu1 }
 0x226   : > { %v4379_v15 = vpop.f32.mrf.mxu0  ;;  %v5981_v11 = vadd.f32 %v1796_v31, %v1576_v47 }
 0x227   : > { %v1518_v6 = vpop.f32.mrf.mxu1  ;;  %4557 = vmatmul.mubr.bf16.gmra.mxu1 %v2488_v33 }
 0x228   : > { %v1809_v40 = vpop.f32.mrf.mxu0  ;;  %v1577_v49 = vadd.f32 %v1518_v6, %v5835_v23  ;;  %4628 = vmatprep.mubr.msk.bf16.mxu1 %vm4944_vm0, %v4943_v38 }
 0x229   : > { %v4326_v35 = vpop.f32.mrf.mxu1 }
 0x22a   : > { %v4382_v16 = vpop.f32.mrf.mxu0  ;;  %v5986_v8 = vadd.f32 %v1801_v41, %v1577_v49 }
 0x22b   : > { %v1521_v48 = vpop.f32.mrf.mxu1 }
 0x22c   : > { %v1812_v13 = vpop.f32.mrf.mxu0  ;;  %v1578_v54 = vadd.f32 %v1521_v48, %v5842_v4 }
 0x22d   : > { %v4327_v51 = vpop.f32.mrf.mxu1 }
 0x22e   : > { %v4383_v60 = vpop.f32.mrf.mxu0  ;;  %v5989_v1 = vadd.f32 %v1804_v46, %v1578_v54 }
 0x22f   : > { %v1526_v30 = vpop.f32.mrf.mxu1  ;;  %4629 = vmatmul.mubr.bf16.vlgmr.msra.gmra.mxu1 %v5554_v14 }
 0x230   : > { %v1817_v25 = vpop.f32.mrf.mxu0  ;;  %v1579_v23 = vadd.f32 %v1526_v30, %v5852_v5  ;;  %4632 = vmatprep.mubr.msk.bf16.mxu1 %vm4944_vm0, %v4943_v38  ;;  %v4894_v30 = vld [vmem:[%s6342_s6 + $0x38] sm:$0xff]  }
 0x231   : > { %v4330_v52 = vpop.f32.mrf.mxu1  ;;  %4665 = vmatpush3.bf16.msra.mxu0 %v4894_v30  ;;  %4724 = vmatpush3.bf16.msra.mxu1 %v4894_v30 }
 0x232   : > { %v4386_v22 = vpop.f32.mrf.mxu0  ;;  %v5995_v31 = vadd.f32 %v1809_v40, %v1579_v23  ;;  %4666 = vmatprep.subr.bf16.mxu0 %v4943_v38  ;;  %4717 = vmatprep.subr.bf16.mxu1 %v4943_v38 }
 0x233   : > { %v1529_v9 = vpop.f32.mrf.mxu1 }
 0x234   : > { %v1820_v42 = vpop.f32.mrf.mxu0  ;;  %v1580_v4 = vadd.f32 %v1529_v9, %v5865_v45 }
 0x235   : > { %v4331_v19 = vpop.f32.mrf.mxu1 }
 0x236   : > { %v4387_v36 = vpop.f32.mrf.mxu0  ;;  %v5998_v62 = vadd.f32 %v1812_v13, %v1580_v4 }
 0x237   : > { %v1534_v10 = vpop.f32.mrf.mxu1  ;;  %4633 = vmatmul.mubr.bf16.gmra.mxu1 %v5557_v58 }
 0x238   : > { %v1825_v14 = vpop.f32.mrf.mxu0  ;;  %v1581_v5 = vadd.f32 %v1534_v10, %v5873_v50  ;;  %4636 = vmatprep.mubr.msk.bf16.mxu1 %vm4944_vm0, %v4943_v38 }
 0x239   : > { %v4334_v18 = vpop.f32.mrf.mxu1 }
 0x23a   : > { %v4390_v41 = vpop.f32.mrf.mxu0  ;;  %v6004_v63 = vadd.f32 %v1817_v25, %v1581_v5 }
 0x23b   : > { %v1537_v43 = vpop.f32.mrf.mxu1 }
 0x23c   : > { %v1828_v61 = vpop.f32.mrf.mxu0  ;;  %v1582_v45 = vadd.f32 %v1537_v43, %v5883_v27 }
 0x23d   : > { %v4335_v55 = vpop.f32.mrf.mxu1 }
 0x23e   : > { %v4391_v59 = vpop.f32.mrf.mxu0  ;;  %v6007_v46 = vadd.f32 %v1820_v42, %v1582_v45 }
 0x23f   : > { %v1542_v47 = vpop.f32.mrf.mxu1  ;;  %4637 = vmatmul.mubr.bf16.gmra.mxu1 %v5562_v29 }
 0x240   : > { %v1833_v58 = vpop.f32.mrf.mxu0  ;;  %v1583_v50 = vadd.f32 %v1542_v47, %v5894_v57  ;;  %4640 = vmatprep.mubr.msk.bf16.mxu1 %vm4944_vm0, %v4943_v38 }
 0x241   : > { %v4338_v0 = vpop.f32.mrf.mxu1 }
 0x242   : > { %v4394_v53 = vpop.f32.mrf.mxu0  ;;  %v6013_v15 = vadd.f32 %v1825_v14, %v1583_v50  ;;  %v4895_v14 = vld [vmem:[%s6342_s6 + $0x30] sm:$0xff]  }
 0x243   : > { %v1545_v33 = vpop.f32.mrf.mxu1  ;;  %4667 = vmatpush3.bf16.msra.mxu0 %v4895_v14  ;;  %4725 = vmatpush3.bf16.msra.mxu1 %v4895_v14 }
 0x244   : > { %v1836_v6 = vpop.f32.mrf.mxu0  ;;  %v1584_v27 = vadd.f32 %v1545_v33, %v5907_v56  ;;  %4668 = vmatprep.subr.bf16.mxu0 %v4943_v38  ;;  %4718 = vmatprep.subr.bf16.mxu1 %v4943_v38 }
 0x245   : > { %v4339_v40 = vpop.f32.mrf.mxu1 }
 0x246   : > { %v4395_v49 = vpop.f32.mrf.mxu0  ;;  %v6016_v35 = vadd.f32 %v1828_v61, %v1584_v27 }
 0x247   : > { %v1550_v16 = vpop.f32.mrf.mxu1  ;;  %4641 = vmatmul.mubr.bf16.gmra.mxu1 %v5565_v32 }
 0x248   : > { %v1841_v29 = vpop.f32.mrf.mxu0  ;;  %v1585_v57 = vadd.f32 %v1550_v16, %v5915_v28  ;;  %4644 = vmatprep.mubr.msk.bf16.mxu1 %vm4944_vm0, %v4943_v38 }
 0x249   : > { %v4342_v48 = vpop.f32.mrf.mxu1 }
 0x24a   : > { %v4398_v13 = vpop.f32.mrf.mxu0  ;;  %v6022_v54 = vadd.f32 %v1833_v58, %v1585_v57 }
 0x24b   : > { %v1553_v51 = vpop.f32.mrf.mxu1  ;;  %v4897_v13 = vld [vmem:[%s6342_s6 + $0x20] sm:$0xff]  }
 0x24c   : > { %v1844_v60 = vpop.f32.mrf.mxu0  ;;  %v1586_v56 = vadd.f32 %v1553_v51, %v5925_v7 }
 0x24d   : > { %v4343_v25 = vpop.f32.mrf.mxu1 }
 0x24e   : > { %v4399_v32 = vpop.f32.mrf.mxu0  ;;  %v6028_v23 = vadd.f32 %v1836_v6, %v1586_v56 }
 0x24f   : > { %v1558_v28 = vpop.f32.mrf.mxu1  ;;  %4645 = vmatmul.mubr.bf16.gmra.mxu1 %v5569_v39  ;;  %v4898_v32 = vld [vmem:[%s6342_s6 + $0x18] sm:$0xff]  }
 0x250   : > { %v1849_v52 = vpop.f32.mrf.mxu0  ;;  %v1587_v22 = vadd.f32 %v1558_v28, %v5933_v34  ;;  %4648 = vmatprep.mubr.msk.bf16.mxu1 %vm4944_vm0, %v4943_v38 }
 0x251   : > { %v4346_v7 = vpop.f32.mrf.mxu1 }
 0x252   : > { %v4402_v9 = vpop.f32.mrf.mxu0  ;;  %v6036_v42 = vadd.f32 %v1841_v29, %v1587_v22 }
 0x253   : > { %v1561_v4 = vpop.f32.mrf.mxu1 }
 0x254   : > { %v1852_v19 = vpop.f32.mrf.mxu0  ;;  %v1588_v36 = vadd.f32 %v1561_v4, %v5942_v37 }
 0x255   : > { %v4347_v10 = vpop.f32.mrf.mxu1 }
 0x256   : > { %v4403_v39 = vpop.f32.mrf.mxu0  ;;  %v6042_v34 = vadd.f32 %v1844_v60, %v1588_v36 }
 0x257   : > { %v1566_v5 = vpop.f32.mrf.mxu1  ;;  %4649 = vmatmul.mubr.bf16.gmra.mxu1 %v5579_v21 }
 0x258   : > { %v2297_v18 = vpop.f32.mrf.mxu0  ;;  %v1589_v41 = vadd.f32 %v1566_v5, %v5946_v20  ;;  %4652 = vmatprep.mubr.msk.bf16.mxu1 %vm4944_vm0, %v4943_v38  ;;  %v4896_v20 = vld [vmem:[%s6342_s6 + $0x28] sm:$0xff]  }
 0x259   : > { %v4350_v37 = vpop.f32.mrf.mxu1  ;;  %4669 = vmatpush3.bf16.msra.mxu0 %v4896_v20  ;;  %4726 = vmatpush3.bf16.msra.mxu1 %v4896_v20 }
 0x25a   : > { %v4474_v43 = vpop.f32.mrf.mxu0  ;;  %v6049_v61 = vadd.f32 %v1849_v52, %v1589_v41  ;;  %4670 = vmatprep.subr.bf16.mxu0 %v4943_v38  ;;  %4719 = vmatprep.subr.bf16.mxu1 %v4943_v38 }
 0x25b   : > { %v1569_v45 = vpop.f32.mrf.mxu1 }
 0x25c   : > { %v2300_v55 = vpop.f32.mrf.mxu0  ;;  %v1590_v21 = vadd.f32 %v1569_v45, %v5952_v17  ;;  %v4900_v45 = vld [vmem:[%s6342_s6 + $0x8] sm:$0xff]  }
 0x25d   : > { %v4351_v59 = vpop.f32.mrf.mxu1  ;;  %4671 = vmatpush3.bf16.msra.mxu0 %v4897_v13  ;;  %4727 = vmatpush3.bf16.msra.mxu1 %v4897_v13 }
 0x25e   : > { %v4475_v47 = vpop.f32.mrf.mxu0  ;;  %v6056_v58 = vadd.f32 %v1852_v19, %v1590_v21  ;;  %4672 = vmatprep.subr.bf16.mxu0 %v4943_v38  ;;  %4720 = vmatprep.subr.bf16.mxu1 %v4943_v38 }
 0x25f   : > { %v2076_v50 = vpop.f32.mrf.mxu1  ;;  %4653 = vmatmul.mubr.bf16.gmra.mxu1 %v5582_v2  ;;  %v4901_v47 = vld [vmem:[%s6342_s6] sm:$0xff]  }
 0x260   : > { %v2305_v0 = vpop.f32.mrf.mxu0  ;;  %v2147_v53 = vadd.f32 %v2076_v50, %v5965_v24  ;;  %4656 = vmatprep.mubr.msk.bf16.mxu1 %vm4944_vm0, %v4943_v38 }
 0x261   : > { %v4422_v17 = vpop.f32.mrf.mxu1  ;;  %4673 = vmatpush3.bf16.msra.mxu0 %v4898_v32  ;;  %4728 = vmatpush3.bf16.msra.mxu1 %v4898_v32 }
 0x262   : > { %v4478_v33 = vpop.f32.mrf.mxu0  ;;  %v6063_v6 = vadd.f32 %v2297_v18, %v2147_v53  ;;  %4674 = vmatprep.subr.bf16.mxu0 %v4943_v38  ;;  %4721 = vmatprep.subr.bf16.mxu1 %v4943_v38 }
 0x263   : > { %v2079_v27 = vpop.f32.mrf.mxu1 }
 0x264   : > { %v2308_v40 = vpop.f32.mrf.mxu0  ;;  %v2148_v2 = vadd.f32 %v2079_v27, %v5970_v26 }
 0x265   : > { %v4423_v49 = vpop.f32.mrf.mxu1 }
 0x266   : > { %v4479_v16 = vpop.f32.mrf.mxu0  ;;  %v6067_v29 = vadd.f32 %v2300_v55, %v2148_v2 }
 0x267   : > { %v2084_v24 = vpop.f32.mrf.mxu1  ;;  %4657 = vmatmul.mubr.bf16.gmra.mxu1 %v5585_v3 }
 0x268   : > { %v2313_v57 = vpop.f32.mrf.mxu0  ;;  %v2149_v48 = vadd.f32 %v2084_v24, %v5977_v44  ;;  %4660 = vmatprep.mubr.msk.bf16.mxu1 %vm4944_vm0, %v4943_v38 }
 0x269   : > { %v4426_v51 = vpop.f32.mrf.mxu1 }
 0x26a   : > { %v4482_v60 = vpop.f32.mrf.mxu0  ;;  %v6076_v26 = vadd.f32 %v2305_v0, %v2149_v48 }
 0x26b   : > { %v2087_v56 = vpop.f32.mrf.mxu1 }
 0x26c   : > { %v2316_v30 = vpop.f32.mrf.mxu0  ;;  %v2150_v3 = vadd.f32 %v2087_v56, %v5981_v11 }
 0x26d   : > { %v4427_v44 = vpop.f32.mrf.mxu1 }
 0x26e   : > { %v4483_v25 = vpop.f32.mrf.mxu0  ;;  %v6084_v28 = vadd.f32 %v2308_v40, %v2150_v3 }
 0x26f   : > { %v2092_v52 = vpop.f32.mrf.mxu1  ;;  %4661 = vmatmul.mubr.bf16.gmra.mxu1 %v5588_v12 }
 0x270   : > { %v2321_v22 = vpop.f32.mrf.mxu0  ;;  %v2151_v7 = vadd.f32 %v2092_v52, %v5986_v8  ;;  %4704 = vmatprep.mubr.msk.bf16.mxu1 %vm4944_vm0, %v4943_v38  ;;  %v4899_v8 = vld [vmem:[%s6342_s6 + $0x10] sm:$0xff]  }
 0x271   : > { %v4430_v9 = vpop.f32.mrf.mxu1  ;;  %4675 = vmatpush3.bf16.msra.mxu0 %v4899_v8  ;;  %4729 = vmatpush3.bf16.msra.mxu1 %v4899_v8 }
 0x272   : > { %v4486_v11 = vpop.f32.mrf.mxu0  ;;  %v6092_v4 = vadd.f32 %v2313_v57, %v2151_v7  ;;  %4676 = vmatprep.subr.bf16.mxu0 %v4943_v38  ;;  %4722 = vmatprep.subr.bf16.mxu1 %v4943_v38 }
 0x273   : > { %v2095_v19 = vpop.f32.mrf.mxu1 }
 0x274   : > { %v2324_v36 = vpop.f32.mrf.mxu0  ;;  %v2152_v12 = vadd.f32 %v2095_v19, %v5989_v1 }
 0x275   : > { %v4431_v10 = vpop.f32.mrf.mxu1  ;;  %4677 = vmatpush3.bf16.msra.mxu0 %v4900_v45  ;;  %4730 = vmatpush3.bf16.msra.mxu1 %v4900_v45 }
 0x276   : > { %v4487_v39 = vpop.f32.mrf.mxu0  ;;  %v6098_v14 = vadd.f32 %v2316_v30, %v2152_v12  ;;  %4678 = vmatprep.subr.bf16.mxu0 %v4943_v38  ;;  %4723 = vmatprep.subr.bf16.mxu1 %v4943_v38 }
 0x277   : > { %v2100_v5 = vpop.f32.mrf.mxu1 }
 0x278   : > { %v2329_v18 = vpop.f32.mrf.mxu0  ;;  %v2153_v41 = vadd.f32 %v2100_v5, %v5995_v31 }
 0x279   : > { %v4434_v37 = vpop.f32.mrf.mxu1  ;;  %4679 = vmatpush3.bf16.msra.mxu0 %v4901_v47  ;;  %4731 = vmatpush3.bf16.msra.mxu1 %v4901_v47 }
 0x27a   : > { %v4490_v1 = vpop.f32.mrf.mxu0  ;;  %v6103_v43 = vadd.f32 %v2321_v22, %v2153_v41 }
 0x27b   : > { %v2103_v55 = vpop.f32.mrf.mxu1 }
 0x27c   : > { %v2332_v21 = vpop.f32.mrf.mxu0  ;;  %v2154_v59 = vadd.f32 %v2103_v55, %v5998_v62 }
 0x27d   : > { %v4435_v20 = vpop.f32.mrf.mxu1 }
 0x27e   : > { %v4491_v31 = vpop.f32.mrf.mxu0  ;;  %v6114_v50 = vadd.f32 %v2324_v36, %v2154_v59 }
 0x27f   : > { %v2108_v0 = vpop.f32.mrf.mxu1 }
 0x280   : > { %v2337_v53 = vpop.f32.mrf.mxu0  ;;  %v2155_v17 = vadd.f32 %v2108_v0, %v6004_v63 }
 0x281   : > { %v4438_v62 = vpop.f32.mrf.mxu1 }
 0x282   : > { %v4494_v33 = vpop.f32.mrf.mxu0  ;;  %v6117_v27 = vadd.f32 %v2329_v18, %v2155_v17 }
 0x283   : > { %v2111_v40 = vpop.f32.mrf.mxu1 }
 0x284   : > { %v2340_v2 = vpop.f32.mrf.mxu0  ;;  %v2156_v49 = vadd.f32 %v2111_v40, %v6007_v46 }
 0x285   : > { %v4439_v16 = vpop.f32.mrf.mxu1 }
 0x286   : > { %v4495_v24 = vpop.f32.mrf.mxu0  ;;  %v6120_v57 = vadd.f32 %v2332_v21, %v2156_v49 }
 0x287   : > { %v2116_v48 = vpop.f32.mrf.mxu1 }
 0x288   : > { %v2345_v13 = vpop.f32.mrf.mxu0  ;;  %v2157_v51 = vadd.f32 %v2116_v48, %v6013_v15 }
 0x289   : > { %v4442_v60 = vpop.f32.mrf.mxu1 }
 0x28a   : > { %v4498_v63 = vpop.f32.mrf.mxu0  ;;  %v6123_v56 = vadd.f32 %v2337_v53, %v2157_v51 }
 0x28b   : > { %v2119_v30 = vpop.f32.mrf.mxu1 }
 0x28c   : > { %v2348_v3 = vpop.f32.mrf.mxu0  ;;  %v2158_v44 = vadd.f32 %v2119_v30, %v6016_v35 }
 0x28d   : > { %v4443_v25 = vpop.f32.mrf.mxu1 }
 0x28e   : > { %v4499_v32 = vpop.f32.mrf.mxu0  ;;  %v6126_v52 = vadd.f32 %v2340_v2, %v2158_v44 }
 0x28f   : > { %v2124_v46 = vpop.f32.mrf.mxu1 }
 0x290   : > { %v2353_v22 = vpop.f32.mrf.mxu0  ;;  %v2159_v7 = vadd.f32 %v2124_v46, %v6022_v54 }
 0x291   : > { %v4446_v9 = vpop.f32.mrf.mxu1 }
 0x292   : > { %v4502_v11 = vpop.f32.mrf.mxu0  ;;  %v6129_v19 = vadd.f32 %v2345_v13, %v2159_v7 }
 0x293   : > { %v2127_v15 = vpop.f32.mrf.mxu1 }
 0x294   : > { %v2356_v36 = vpop.f32.mrf.mxu0  ;;  %v2160_v12 = vadd.f32 %v2127_v15, %v6028_v23 }
 0x295   : > { %v4447_v8 = vpop.f32.mrf.mxu1 }
 0x296   : > { %v4503_v10 = vpop.f32.mrf.mxu0  ;;  %v6132_v39 = vadd.f32 %v2348_v3, %v2160_v12 }
 0x297   : > { %v2132_v35 = vpop.f32.mrf.mxu1 }
 0x298   : > { %v2361_v5 = vpop.f32.mrf.mxu0  ;;  %v2161_v18 = vadd.f32 %v2132_v35, %v6036_v42 }
 0x299   : > { %v4450_v41 = vpop.f32.mrf.mxu1 }
 0x29a   : > { %v4506_v37 = vpop.f32.mrf.mxu0  ;;  %v6135_v1 = vadd.f32 %v2353_v22, %v2161_v18 }
 0x29b   : > { %v2135_v54 = vpop.f32.mrf.mxu1 }
 0x29c   : > { %v2364_v45 = vpop.f32.mrf.mxu0  ;;  %v2162_v55 = vadd.f32 %v2135_v54, %v6042_v34 }
 0x29d   : > { %v4451_v21 = vpop.f32.mrf.mxu1 }
 0x29e   : > { %v4507_v59 = vpop.f32.mrf.mxu0  ;;  %v6138_v47 = vadd.f32 %v2356_v36, %v2162_v55 }
 0x29f   : > { %v2140_v23 = vpop.f32.mrf.mxu1 }
 0x2a0   : > { %v2871_v20 = vpop.f32.mrf.mxu0  ;;  %v2163_v31 = vadd.f32 %v2140_v23, %v6049_v61 }
 0x2a1   : > { %v4454_v0 = vpop.f32.mrf.mxu1 }
 0x2a2   : > { %v4578_v53 = vpop.f32.mrf.mxu0  ;;  %v6141_v17 = vadd.f32 %v2361_v5, %v2163_v31 }
 0x2a3   : > { %v2143_v42 = vpop.f32.mrf.mxu1 }
 0x2a4   : > { %v2874_v62 = vpop.f32.mrf.mxu0  ;;  %v2164_v33 = vadd.f32 %v2143_v42, %v6056_v58 }
 0x2a5   : > { %v4455_v40 = vpop.f32.mrf.mxu1 }
 0x2a6   : > { %v4579_v2 = vpop.f32.mrf.mxu0  ;;  %v6144_v49 = vadd.f32 %v2364_v45, %v2164_v33 }
 0x2a7   : > { %v2580_v34 = vpop.f32.mrf.mxu1 }
 0x2a8   : > { %v2879_v16 = vpop.f32.mrf.mxu0  ;;  %v2651_v24 = vadd.f32 %v2580_v34, %v6063_v6 }
 0x2a9   : > { %v4526_v48 = vpop.f32.mrf.mxu1 }
 0x2aa   : > { %v4582_v13 = vpop.f32.mrf.mxu0  ;;  %v6147_v51 = vadd.f32 %v2871_v20, %v2651_v24 }
 0x2ab   : > { %v2583_v61 = vpop.f32.mrf.mxu1 }
 0x2ac   : > { %v2882_v60 = vpop.f32.mrf.mxu0  ;;  %v2652_v63 = vadd.f32 %v2583_v61, %v6067_v29 }
 0x2ad   : > { %v4527_v30 = vpop.f32.mrf.mxu1 }
 0x2ae   : > { %v4583_v3 = vpop.f32.mrf.mxu0  ;;  %v6150_v44 = vadd.f32 %v2874_v62, %v2652_v63 }
 0x2af   : > { %v2588_v58 = vpop.f32.mrf.mxu1 }
 0x2b0   : > { %v2887_v25 = vpop.f32.mrf.mxu0  ;;  %v2653_v32 = vadd.f32 %v2588_v58, %v6076_v26 }
 0x2b1   : > { %v4530_v46 = vpop.f32.mrf.mxu1 }
 0x2b2   : > { %v4586_v22 = vpop.f32.mrf.mxu0  ;;  %v6153_v7 = vadd.f32 %v2879_v16, %v2653_v32 }
 0x2b3   : > { %v2591_v6 = vpop.f32.mrf.mxu1 }
 0x2b4   : > { %v2890_v9 = vpop.f32.mrf.mxu0  ;;  %v2654_v11 = vadd.f32 %v2591_v6, %v6084_v28 }
 0x2b5   : > { %v4531_v15 = vpop.f32.mrf.mxu1 }
 0x2b6   : > { %v4587_v36 = vpop.f32.mrf.mxu0  ;;  %v6156_v12 = vadd.f32 %v2882_v60, %v2654_v11 }
 0x2b7   : > { %v2596_v29 = vpop.f32.mrf.mxu1 }
 0x2b8   : > { %v2895_v8 = vpop.f32.mrf.mxu0  ;;  %v2655_v10 = vadd.f32 %v2596_v29, %v6092_v4 }
 0x2b9   : > { %v4534_v35 = vpop.f32.mrf.mxu1 }
 0x2ba   : > { %v4590_v5 = vpop.f32.mrf.mxu0  ;;  %v6159_v18 = vadd.f32 %v2887_v25, %v2655_v10 }
 0x2bb   : > { %v2599_v26 = vpop.f32.mrf.mxu1 }
 0x2bc   : > { %v2898_v41 = vpop.f32.mrf.mxu0  ;;  %v2656_v37 = vadd.f32 %v2599_v26, %v6098_v14 }
 0x2bd   : > { %v4535_v54 = vpop.f32.mrf.mxu1 }
 0x2be   : > { %v4591_v45 = vpop.f32.mrf.mxu0  ;;  %v6162_v55 = vadd.f32 %v2890_v9, %v2656_v37 }
 0x2bf   : > { %v2604_v28 = vpop.f32.mrf.mxu1 }
 0x2c0   : > { %v2903_v21 = vpop.f32.mrf.mxu0  ;;  %v2657_v59 = vadd.f32 %v2604_v28, %v6103_v43 }
 0x2c1   : > { %v4538_v23 = vpop.f32.mrf.mxu1 }
 0x2c2   : > { %v4594_v20 = vpop.f32.mrf.mxu0  ;;  %v6165_v31 = vadd.f32 %v2895_v8, %v2657_v59 }
 0x2c3   : > { %v2607_v4 = vpop.f32.mrf.mxu1 }
 0x2c4   : > { %v2906_v0 = vpop.f32.mrf.mxu0  ;;  %v2658_v53 = vadd.f32 %v2607_v4, %v6114_v50 }
 0x2c5   : > { %v4539_v42 = vpop.f32.mrf.mxu1 }
 0x2c6   : > { %v4595_v62 = vpop.f32.mrf.mxu0  ;;  %v6168_v33 = vadd.f32 %v2898_v41, %v2658_v53 }
 0x2c7   : > { %v2612_v14 = vpop.f32.mrf.mxu1 }
 0x2c8   : > { %v2911_v40 = vpop.f32.mrf.mxu0  ;;  %v2659_v2 = vadd.f32 %v2612_v14, %v6117_v27 }
 0x2c9   : > { %v4542_v34 = vpop.f32.mrf.mxu1 }
 0x2ca   : > { %v4598_v16 = vpop.f32.mrf.mxu0  ;;  %v6171_v24 = vadd.f32 %v2903_v21, %v2659_v2 }
 0x2cb   : > { %v2615_v43 = vpop.f32.mrf.mxu1 }
 0x2cc   : > { %v2914_v48 = vpop.f32.mrf.mxu0  ;;  %v2660_v13 = vadd.f32 %v2615_v43, %v6120_v57 }
 0x2cd   : > { %v4543_v61 = vpop.f32.mrf.mxu1 }
 0x2ce   : > { %v4599_v60 = vpop.f32.mrf.mxu0  ;;  %v6174_v63 = vadd.f32 %v2906_v0, %v2660_v13 }
 0x2cf   : > { %v2620_v50 = vpop.f32.mrf.mxu1 }
 0x2d0   : > { %v2919_v30 = vpop.f32.mrf.mxu0  ;;  %v2661_v3 = vadd.f32 %v2620_v50, %v6123_v56 }
 0x2d1   : > { %v4546_v58 = vpop.f32.mrf.mxu1 }
 0x2d2   : > { %v4602_v25 = vpop.f32.mrf.mxu0  ;;  %v6177_v32 = vadd.f32 %v2911_v40, %v2661_v3 }
 0x2d3   : > { %v2623_v27 = vpop.f32.mrf.mxu1 }
 0x2d4   : > { %v2922_v46 = vpop.f32.mrf.mxu0  ;;  %v2662_v22 = vadd.f32 %v2623_v27, %v6126_v52 }
 0x2d5   : > { %v4547_v6 = vpop.f32.mrf.mxu1 }
 0x2d6   : > { %v4603_v9 = vpop.f32.mrf.mxu0  ;;  %v6180_v11 = vadd.f32 %v2914_v48, %v2662_v22 }
 0x2d7   : > { %v2628_v57 = vpop.f32.mrf.mxu1 }
 0x2d8   : > { %v2927_v15 = vpop.f32.mrf.mxu0  ;;  %v2663_v36 = vadd.f32 %v2628_v57, %v6129_v19 }
 0x2d9   : > { %v4550_v29 = vpop.f32.mrf.mxu1 }
 0x2da   : > { %v4606_v8 = vpop.f32.mrf.mxu0  ;;  %v6183_v10 = vadd.f32 %v2919_v30, %v2663_v36 }
 0x2db   : > { %v2631_v56 = vpop.f32.mrf.mxu1 }
 0x2dc   : > { %v2930_v35 = vpop.f32.mrf.mxu0  ;;  %v2664_v5 = vadd.f32 %v2631_v56, %v6132_v39 }
 0x2dd   : > { %v4551_v26 = vpop.f32.mrf.mxu1 }
 0x2de   : > { %v4607_v41 = vpop.f32.mrf.mxu0  ;;  %v6186_v37 = vadd.f32 %v2922_v46, %v2664_v5 }
 0x2df   : > { %v2636_v52 = vpop.f32.mrf.mxu1 }
 0x2e0   : > { %v2935_v54 = vpop.f32.mrf.mxu0  ;;  %v2665_v45 = vadd.f32 %v2636_v52, %v6135_v1 }
 0x2e1   : > { %v4554_v28 = vpop.f32.mrf.mxu1 }
 0x2e2   : > { %v4610_v21 = vpop.f32.mrf.mxu0  ;;  %v6189_v59 = vadd.f32 %v2927_v15, %v2665_v45 }
 0x2e3   : > { %v2639_v19 = vpop.f32.mrf.mxu1 }
 0x2e4   : > { %v2938_v23 = vpop.f32.mrf.mxu0  ;;  %v2666_v20 = vadd.f32 %v2639_v19, %v6138_v47  ;;  %v6204_v47 = vld [vmem:[%s6341_s5] ss:$0 sm:$0xff] }
 0x2e5   : > { %v4555_v4 = vpop.f32.mrf.mxu1 }
 0x2e6   : > { %v4611_v0 = vpop.f32.mrf.mxu0  ;;  %v6192_v53 = vadd.f32 %v2930_v35, %v2666_v20 }
 0x2e7   : > { %v2644_v39 = vpop.f32.mrf.mxu1 }
 0x2e8   : > { %v2667_v42 = vadd.f32 %v2644_v39, %v6141_v17 }
 0x2e9   : > { %v4558_v62 = vpop.f32.mrf.mxu1 }
 0x2ea   : > { %v6195_v14 = vadd.f32 %v2935_v54, %v2667_v42 }
 0x2eb   : > { %v2647_v40 = vpop.f32.mrf.mxu1 }
 0x2ec   : > { %v2668_v1 = vadd.f32 %v2647_v40, %v6144_v49 }
 0x2ed   : > { %v4559_v2 = vpop.f32.mrf.mxu1 }
 0x2ee   : > { %v6198_v34 = vadd.f32 %v2938_v23, %v2668_v1 }
 0x2ef   : > { %v3092_v16 = vpop.f32.mrf.mxu1 }
 0x2f0   : > { %v3163_v43 = vadd.f32 %v3092_v16, %v6147_v51 }
 0x2f1   : > { %v4630_v48 = vpop.f32.mrf.mxu1 }
 0x2f2   : > { %v3188_v17 = vadd.f32 %v6204_v47, %v3163_v43 }
 0x2f3   : > { %v3095_v13 = vpop.f32.mrf.mxu1 }
 0x2f4   : > { %v3164_v61 = vadd.f32 %v3095_v13, %v6150_v44  ;;  %v3206_v30 = vmax.f32 %v3188_v17, 0.0 }
 0x2f5   : > { %v4631_v60 = vpop.f32.mrf.mxu1 }
 0x2f6   : > { %v3189_v49 = vadd.f32 %v6204_v47, %v3164_v61 }
 0x2f7   : > { %v3100_v50 = vpop.f32.mrf.mxu1 }
 0x2f8   : > { %v3207_v3 = vmax.f32 %v3189_v49, 0.0  ;;  %v3165_v58 = vadd.f32 %v3100_v50, %v6153_v7 }
 0x2f9   : > { %v4634_v51 = vpop.f32.mrf.mxu1 }
 0x2fa   : > { %v3224_v25 = vpack.c.bf16 %v3207_v3, %v3206_v30  ;;  %v3190_v46 = vadd.f32 %v6204_v47, %v3165_v58 }
 0x2fb   : > { %v3103_v27 = vpop.f32.mrf.mxu1 }
 0x2fc   : > { %v3166_v22 = vadd.f32 %v3103_v27, %v6156_v12  ;;  %4681 = vmatmul.mubr.bf16.vlgmr.msra.gmra.mxu0 %v3224_v25  ;;  %v3208_v57 = vmax.f32 %v3190_v46, 0.0 }
 0x2fd   : > { %v4635_v6 = vpop.f32.mrf.mxu1  ;;  %4684 = vmatprep.mubr.msk.bf16.mxu0 %vm4944_vm0, %v4943_v38 }
 0x2fe   : > { %v3191_v44 = vadd.f32 %v6204_v47, %v3166_v22 }
 0x2ff   : > { %v3108_v9 = vpop.f32.mrf.mxu1 }
 0x300   : > { %v3209_v15 = vmax.f32 %v3191_v44, 0.0  ;;  %v3167_v36 = vadd.f32 %v3108_v9, %v6159_v18 }
 0x301   : > { %v4638_v7 = vpop.f32.mrf.mxu1 }
 0x302   : > { %v3225_v29 = vpack.c.bf16 %v3209_v15, %v3208_v57  ;;  %v3192_v56 = vadd.f32 %v6204_v47, %v3167_v36 }
 0x303   : > { %v3111_v8 = vpop.f32.mrf.mxu1 }
 0x304   : > { %v3168_v35 = vadd.f32 %v3111_v8, %v6162_v55  ;;  %4685 = vmatmul.mubr.bf16.gmra.mxu0 %v3225_v29  ;;  %v3210_v41 = vmax.f32 %v3192_v56, 0.0 }
 0x305   : > { %v4639_v12 = vpop.f32.mrf.mxu1  ;;  %4688 = vmatprep.mubr.msk.bf16.mxu0 %vm4944_vm0, %v4943_v38 }
 0x306   : > { %v3193_v5 = vadd.f32 %v6204_v47, %v3168_v35 }
 0x307   : > { %v3116_v26 = vpop.f32.mrf.mxu1 }
 0x308   : > { %v3211_v52 = vmax.f32 %v3193_v5, 0.0  ;;  %v3169_v54 = vadd.f32 %v3116_v26, %v6165_v31 }
 0x309   : > { %v4642_v18 = vpop.f32.mrf.mxu1 }
 0x30a   : > { %v3226_v45 = vpack.c.bf16 %v3211_v52, %v3210_v41  ;;  %v3194_v21 = vadd.f32 %v6204_v47, %v3169_v54 }
 0x30b   : > { %v3119_v28 = vpop.f32.mrf.mxu1 }
 0x30c   : > { %v3170_v19 = vadd.f32 %v3119_v28, %v6168_v33  ;;  %4689 = vmatmul.mubr.bf16.gmra.mxu0 %v3226_v45  ;;  %v3212_v4 = vmax.f32 %v3194_v21, 0.0 }
 0x30d   : > { %v4643_v55 = vpop.f32.mrf.mxu1  ;;  %4692 = vmatprep.mubr.msk.bf16.mxu0 %vm4944_vm0, %v4943_v38 }
 0x30e   : > { %v3195_v23 = vadd.f32 %v6204_v47, %v3170_v19  ;;  %v3849_v19 = vld [vmem:[%s5038_s23 + $0x13] sm:$0xff] }
 0x30f   : > { %v3124_v20 = vpop.f32.mrf.mxu1 }
 0x310   : > { %v3213_v0 = vmax.f32 %v3195_v23, 0.0  ;;  %v3171_v39 = vadd.f32 %v3124_v20, %v6171_v24  ;;  %v3850_v20 = vld [vmem:[%s5038_s23 + $0x1b] sm:$0xff] }
 0x311   : > { %v4646_v31 = vpop.f32.mrf.mxu1 }
 0x312   : > { %v3227_v42 = vpack.c.bf16 %v3213_v0, %v3212_v4  ;;  %v3196_v40 = vadd.f32 %v6204_v47, %v3171_v39 }
 0x313   : > { %v3127_v62 = vpop.f32.mrf.mxu1 }
 0x314   : > { %v3172_v1 = vadd.f32 %v3127_v62, %v6174_v63  ;;  %4693 = vmatmul.mubr.bf16.gmra.mxu0 %v3227_v42  ;;  %v3214_v43 = vmax.f32 %v3196_v40, 0.0  ;;  %v3851_v62 = vld [vmem:[%s5038_s23 + $0x23] sm:$0xff] }
 0x315   : > { %v4647_v33 = vpop.f32.mrf.mxu1  ;;  %4696 = vmatprep.mubr.msk.bf16.mxu0 %vm4944_vm0, %v4943_v38 }
 0x316   : > { %v3197_v2 = vadd.f32 %v6204_v47, %v3172_v1 }
 0x317   : > { %v3132_v16 = vpop.f32.mrf.mxu1 }
 0x318   : > { %v3215_v48 = vmax.f32 %v3197_v2, 0.0  ;;  %v3173_v13 = vadd.f32 %v3132_v16, %v6177_v32 }
 0x319   : > { %v4650_v24 = vpop.f32.mrf.mxu1 }
 0x31a   : > { %v3228_v17 = vpack.c.bf16 %v3215_v48, %v3214_v43  ;;  %v3198_v60 = vadd.f32 %v6204_v47, %v3173_v13  ;;  %v3852_v43 = vld [vmem:[%s5038_s23 + $0x2b] sm:$0xff] }
 0x31b   : > { %v3135_v61 = vpop.f32.mrf.mxu1 }
 0x31c   : > { %v3174_v49 = vadd.f32 %v3135_v61, %v6180_v11  ;;  %4697 = vmatmul.mubr.bf16.gmra.mxu0 %v3228_v17  ;;  %v3216_v3 = vmax.f32 %v3198_v60, 0.0  ;;  %v3853_v60 = vld [vmem:[%s5038_s23 + $0x33] sm:$0xff] }
 0x31d   : > { %v4651_v63 = vpop.f32.mrf.mxu1  ;;  %4700 = vmatprep.mubr.msk.bf16.mxu0 %vm4944_vm0, %v4943_v38 }
 0x31e   : > { %v3199_v50 = vadd.f32 %v6204_v47, %v3174_v49 }
 0x31f   : > { %v3140_v30 = vpop.f32.mrf.mxu1 }
 0x320   : > { %v3217_v58 = vmax.f32 %v3199_v50, 0.0  ;;  %v3175_v51 = vadd.f32 %v3140_v30, %v6183_v10 }
 0x321   : > { %v4654_v32 = vpop.f32.mrf.mxu1 }
 0x322   : > { %v3229_v25 = vpack.c.bf16 %v3217_v58, %v3216_v3  ;;  %v3200_v46 = vadd.f32 %v6204_v47, %v3175_v51  ;;  %v3854_v58 = vld [vmem:[%s5038_s23 + $0x3b] sm:$0xff] }
 0x323   : > { %v3143_v27 = vpop.f32.mrf.mxu1 }
 0x324   : > { %v3176_v22 = vadd.f32 %v3143_v27, %v6186_v37  ;;  %4701 = vmatmul.mubr.bf16.gmra.mxu0 %v3229_v25  ;;  %v3218_v9 = vmax.f32 %v3200_v46, 0.0 }
 0x325   : > { %v4655_v11 = vpop.f32.mrf.mxu1 }
 0x326   : > { %v3201_v6 = vadd.f32 %v6204_v47, %v3176_v22  ;;  %v3855_v22 = vld [vmem:[%s5038_s23 + $0x43] sm:$0xff] }
 0x327   : > { %v3148_v44 = vpop.f32.mrf.mxu1 }
 0x328   : > { %v3219_v57 = vmax.f32 %v3201_v6, 0.0  ;;  %v3177_v15 = vadd.f32 %v3148_v44, %v6189_v59 }
 0x329   : > { %v4658_v36 = vpop.f32.mrf.mxu1 }
 0x32a   : > { %v3230_v7 = vpack.c.bf16 %v3219_v57, %v3218_v9  ;;  %v3202_v10 = vadd.f32 %v6204_v47, %v3177_v15  ;;  %v3856_v15 = vld [vmem:[%s5038_s23 + $0x4b] sm:$0xff] }
 0x32b   : > { %v3151_v29 = vpop.f32.mrf.mxu1 }
 0x32c   : > { %v3178_v8 = vadd.f32 %v3151_v29, %v6192_v53  ;;  %4705 = vmatmul.mubr.bf16.vlgmr.msra.gmra.mxu1 %v3230_v7  ;;  %v3220_v12 = vmax.f32 %v3202_v10, 0.0 }
 0x32d   : > { %v4659_v56 = vpop.f32.mrf.mxu1  ;;  %4708 = vmatprep.mubr.msk.bf16.mxu1 %vm4944_vm0, %v4943_v38 }
 0x32e   : > { %v3203_v37 = vadd.f32 %v6204_v47, %v3178_v8  ;;  %v3857_v56 = vld [vmem:[%s5038_s23 + $0x53] sm:$0xff] }
 0x32f   : > { %v3156_v35 = vpop.f32.mrf.mxu1 }
 0x330   : > { %v3221_v5 = vmax.f32 %v3203_v37, 0.0  ;;  %v3179_v59 = vadd.f32 %v3156_v35, %v6195_v14 }
 0x331   : > { %v4662_v26 = vpop.f32.mrf.mxu1 }
 0x332   : > { %v3231_v41 = vpack.c.bf16 %v3221_v5, %v3220_v12  ;;  %v3204_v52 = vadd.f32 %v6204_v47, %v3179_v59  ;;  %v3858_v26 = vld [vmem:[%s5038_s23 + $0x5b] sm:$0xff] }
 0x333   : > { %v3159_v54 = vpop.f32.mrf.mxu1 }
 0x334   : > { %v3180_v53 = vadd.f32 %v3159_v54, %v6198_v34  ;;  %4709 = vmatmul.mubr.bf16.gmra.mxu1 %v3231_v41  ;;  %v3222_v28 = vmax.f32 %v3204_v52, 0.0  ;;  %v6260_v34 = vld [vmem:[%s6343_s7] ss:$0 sm:$0xff] }
 0x335   : > { %v4663_v18 = vpop.f32.mrf.mxu1  ;;  %4712 = vmatprep.mubr.msk.bf16.mxu1 %vm4944_vm0, %v4943_v38 }
 0x336   : > { %v3205_v45 = vadd.f32 %v6204_v47, %v3180_v53 }
 0x338   : > { %v3223_v21 = vmax.f32 %v3205_v45, 0.0  ;;  %v3859_v45 = vld [vmem:[%s5038_s23 + $0x63] sm:$0xff] }
 0x33a   : > { %v3232_v14 = vpack.c.bf16 %v3223_v21, %v3222_v28 }
 0x33c   : > { %4713 = vmatmul.mubr.bf16.gmra.mxu1 %v3232_v14 }
 0x3bc   : > { %v3358_v38 = vpop.f32.mrf.mxu0 }
 0x3bd   : > { %v3359_v47 = vadd.f32 %v6260_v34, %v3358_v38 }
 0x3be   : > { %v4682_v55 = vpop.f32.mrf.mxu0 }
 0x3bf   : > { %v3429_v23 = vadd.f32 %v3849_v19, %v3359_v47  ;;  %v3860_v47 = vld [vmem:[%s5038_s23 + $0x6b] sm:$0xff] }
 0x3c0   : > { %v3361_v4 = vpop.f32.mrf.mxu0 }
 0x3c1   : > { %v3447_v0 = vmax.f32 %v3429_v23, 0.0  ;;  %v3362_v39 = vadd.f32 %v6260_v34, %v3361_v4 }
 0x3c2   : > { %v4683_v31 = vpop.f32.mrf.mxu0 }
 0x3c3   : > { %3465 = vst [vmem:[%s6267_s27] sm:$0xff] %v3447_v0  ;;  %v3430_v42 = vadd.f32 %v3850_v20, %v3362_v39  ;;  %v3861_v39 = vld [vmem:[%s5038_s23 + $0x73] sm:$0xff] }
 0x3c4   : > { %v3366_v40 = vpop.f32.mrf.mxu0 }
 0x3c5   : > { %v3448_v1 = vmax.f32 %v3430_v42, 0.0  ;;  %v3367_v33 = vadd.f32 %v6260_v34, %v3366_v40 }
 0x3c6   : > { %v4686_v2 = vpop.f32.mrf.mxu0 }
 0x3c7   : > { %3466 = vst [vmem:[%s6267_s27 + $0x8] sm:$0xff] %v3448_v1  ;;  %v3431_v16 = vadd.f32 %v3851_v62, %v3367_v33  ;;  %v3862_v33 = vld [vmem:[%s5038_s23 + $0x7b] sm:$0xff] }
 0x3c8   : > { %v3369_v48 = vpop.f32.mrf.mxu0 }
 0x3c9   : > { %v3449_v13 = vmax.f32 %v3431_v16, 0.0  ;;  %v3370_v24 = vadd.f32 %v6260_v34, %v3369_v48 }
 0x3ca   : > { %v4687_v17 = vpop.f32.mrf.mxu0 }
 0x3cb   : > { %3467 = vst [vmem:[%s6267_s27 + $0x10] sm:$0xff] %v3449_v13  ;;  %v3432_v61 = vadd.f32 %v3852_v43, %v3370_v24  ;;  %v3863_v24 = vld [vmem:[%s5038_s23 + $0x83] sm:$0xff] }
 0x3cc   : > { %v3374_v49 = vpop.f32.mrf.mxu0 }
 0x3cd   : > { %v3450_v63 = vmax.f32 %v3432_v61, 0.0  ;;  %v3375_v50 = vadd.f32 %v6260_v34, %v3374_v49 }
 0x3ce   : > { %v4690_v30 = vpop.f32.mrf.mxu0 }
 0x3cf   : > { %3468 = vst [vmem:[%s6267_s27 + $0x18] sm:$0xff] %v3450_v63  ;;  %v3433_v3 = vadd.f32 %v3853_v60, %v3375_v50  ;;  %v3864_v50 = vld [vmem:[%s5038_s23 + $0x8b] sm:$0xff] }
 0x3d0   : > { %v3377_v51 = vpop.f32.mrf.mxu0 }
 0x3d1   : > { %v3451_v32 = vmax.f32 %v3433_v3, 0.0  ;;  %v3378_v25 = vadd.f32 %v6260_v34, %v3377_v51 }
 0x3d2   : > { %v4691_v27 = vpop.f32.mrf.mxu0 }
 0x3d3   : > { %3469 = vst [vmem:[%s6267_s27 + $0x20] sm:$0xff] %v3451_v32  ;;  %v3434_v46 = vadd.f32 %v3854_v58, %v3378_v25  ;;  %v3865_v25 = vld [vmem:[%s5038_s23 + $0x93] sm:$0xff] }
 0x3d4   : > { %v3382_v11 = vpop.f32.mrf.mxu0 }
 0x3d5   : > { %v3452_v6 = vmax.f32 %v3434_v46, 0.0  ;;  %v3383_v44 = vadd.f32 %v6260_v34, %v3382_v11 }
 0x3d6   : > { %v4694_v9 = vpop.f32.mrf.mxu0 }
 0x3d7   : > { %3470 = vst [vmem:[%s6267_s27 + $0x28] sm:$0xff] %v3452_v6  ;;  %v3435_v57 = vadd.f32 %v3855_v22, %v3383_v44  ;;  %v3866_v44 = vld [vmem:[%s5038_s23 + $0x9b] sm:$0xff] }
 0x3d8   : > { %v3385_v36 = vpop.f32.mrf.mxu0 }
 0x3d9   : > { %v3453_v7 = vmax.f32 %v3435_v57, 0.0  ;;  %v3386_v29 = vadd.f32 %v6260_v34, %v3385_v36 }
 0x3da   : > { %v4695_v10 = vpop.f32.mrf.mxu0 }
 0x3db   : > { %3471 = vst [vmem:[%s6267_s27 + $0x30] sm:$0xff] %v3453_v7  ;;  %v3436_v8 = vadd.f32 %v3856_v15, %v3386_v29 }
 0x3dc   : > { %v3390_v37 = vpop.f32.mrf.mxu0 }
 0x3dd   : > { %v3454_v35 = vmax.f32 %v3436_v8, 0.0  ;;  %v3391_v12 = vadd.f32 %v6260_v34, %v3390_v37 }
 0x3de   : > { %v4698_v5 = vpop.f32.mrf.mxu0 }
 0x3df   : > { %3472 = vst [vmem:[%s6267_s27 + $0x38] sm:$0xff] %v3454_v35  ;;  %v3437_v59 = vadd.f32 %v3857_v56, %v3391_v12 }
 0x3e0   : > { %v3393_v41 = vpop.f32.mrf.mxu0 }
 0x3e1   : > { %v3455_v52 = vmax.f32 %v3437_v59, 0.0  ;;  %v3394_v54 = vadd.f32 %v6260_v34, %v3393_v41 }
 0x3e2   : > { %v4699_v53 = vpop.f32.mrf.mxu0 }
 0x3e3   : > { %3473 = vst [vmem:[%s6267_s27 + $0x40] sm:$0xff] %v3455_v52  ;;  %v3438_v18 = vadd.f32 %v3858_v26, %v3394_v54 }
 0x3e4   : > { %v3398_v28 = vpop.f32.mrf.mxu0 }
 0x3e5   : > { %v3456_v21 = vmax.f32 %v3438_v18, 0.0  ;;  %v3399_v14 = vadd.f32 %v6260_v34, %v3398_v28 }
 0x3e6   : > { %v4702_v19 = vpop.f32.mrf.mxu0 }
 0x3e7   : > { %3474 = vst [vmem:[%s6267_s27 + $0x48] sm:$0xff] %v3456_v21  ;;  %v3439_v38 = vadd.f32 %v3859_v45, %v3399_v14 }
 0x3e8   : > { %v3401_v55 = vpop.f32.mrf.mxu0 }
 0x3e9   : > { %v3457_v23 = vmax.f32 %v3439_v38, 0.0  ;;  %v3402_v20 = vadd.f32 %v6260_v34, %v3401_v55 }
 0x3ea   : > { %v4703_v4 = vpop.f32.mrf.mxu0 }
 0x3eb   : > { %3475 = vst [vmem:[%s6267_s27 + $0x50] sm:$0xff] %v3457_v23  ;;  %v3440_v0 = vadd.f32 %v3860_v47, %v3402_v20 }
 0x3ec   : > { %v3406_v31 = vpop.f32.mrf.mxu1 }
 0x3ed   : > { %v3458_v42 = vmax.f32 %v3440_v0, 0.0  ;;  %v3407_v62 = vadd.f32 %v6260_v34, %v3406_v31 }
 0x3ee   : > { %v4706_v40 = vpop.f32.mrf.mxu1 }
 0x3ef   : > { %3476 = vst [vmem:[%s6267_s27 + $0x58] sm:$0xff] %v3458_v42  ;;  %v3441_v1 = vadd.f32 %v3861_v39, %v3407_v62 }
 0x3f0   : > { %v3409_v2 = vpop.f32.mrf.mxu1 }
 0x3f1   : > { %v3459_v16 = vmax.f32 %v3441_v1, 0.0  ;;  %v3410_v43 = vadd.f32 %v6260_v34, %v3409_v2 }
 0x3f2   : > { %v4707_v48 = vpop.f32.mrf.mxu1 }
 0x3f3   : > { %3477 = vst [vmem:[%s6267_s27 + $0x60] sm:$0xff] %v3459_v16  ;;  %v3442_v13 = vadd.f32 %v3862_v33, %v3410_v43 }
 0x3f4   : > { %v3414_v17 = vpop.f32.mrf.mxu1 }
 0x3f5   : > { %v3460_v61 = vmax.f32 %v3442_v13, 0.0  ;;  %v3415_v60 = vadd.f32 %v6260_v34, %v3414_v17 }
 0x3f6   : > { %v4710_v49 = vpop.f32.mrf.mxu1 }
 0x3f7   : > { %3478 = vst [vmem:[%s6267_s27 + $0x68] sm:$0xff] %v3460_v61  ;;  %v3443_v63 = vadd.f32 %v3863_v24, %v3415_v60 }
 0x3f8   : > { %v3417_v30 = vpop.f32.mrf.mxu1 }
 0x3f9   : > { %v3461_v3 = vmax.f32 %v3443_v63, 0.0  ;;  %v3418_v58 = vadd.f32 %v6260_v34, %v3417_v30 }
 0x3fa   : > { %v4711_v51 = vpop.f32.mrf.mxu1 }
 0x3fb   : > { %3479 = vst [vmem:[%s6267_s27 + $0x70] sm:$0xff] %v3461_v3  ;;  %v3444_v32 = vadd.f32 %v3864_v50, %v3418_v58 }
 0x3fc   : > { %v3422_v27 = vpop.f32.mrf.mxu1 }
 0x3fd   : > { %v3462_v46 = vmax.f32 %v3444_v32, 0.0  ;;  %v3423_v22 = vadd.f32 %v6260_v34, %v3422_v27 }
 0x3fe   : > { %v4714_v11 = vpop.f32.mrf.mxu1 }
 0x3ff   : > { %3480 = vst [vmem:[%s6267_s27 + $0x78] sm:$0xff] %v3462_v46  ;;  %v3445_v6 = vadd.f32 %v3865_v25, %v3423_v22 }
 0x400   : > { %v3425_v9 = vpop.f32.mrf.mxu1 }
 0x401   : > { %v3463_v57 = vmax.f32 %v3445_v6, 0.0  ;;  %v3426_v15 = vadd.f32 %v6260_v34, %v3425_v9 }
 0x402   : > { %v4715_v36 = vpop.f32.mrf.mxu1 }
 0x403   : > { %3481 = vst [vmem:[%s6267_s27 + $0x80] sm:$0xff] %v3463_v57  ;;  %v3446_v7 = vadd.f32 %v3866_v44, %v3426_v15 }
 0x405   : > { %v3464_v29 = vmax.f32 %v3446_v7, 0.0 }
 0x407   : > { %3482 = vst [vmem:[%s6267_s27 + $0x88] sm:$0xff] %v3464_v29 }
 0x408 PF: > { %s18_s9 = sadd.s32 1, %s4940_s9   ;;  %s6345_s27 = smov %s4932_s29 }
 0x409   : > { %p15_p7 = scmp.ge.s32.totalorder %s18_s9, 6   ;;  %s6346_s28 = smov %s4936_s30 }
 0x40a   : > { %s6347_s29 = smov %s6350_s10  ;;  %s6348_s30 = smov %s6354_s11 }
 0x40b   :  { %17 = sbr.rel (!%p15_p7) target bundleno = 3 (0x3), region = 93 }

</bundles_post_ra>
